<compile_context>
chip_gen: v5e
topology: v5e:2x2
jax: 0.10.0
libtpu: 0.0.40
codegen_flags: <defaults>
</compile_context>

<pallas_src>
import functools

import jax
import jax.numpy as jnp
from jax.experimental import pallas as pl
from jax.experimental.pallas import tpu as pltpu


def _round_up(x, m):
    return (x + m - 1) // m * m


# --------------------------------------------------------------------------
# Kernels
# --------------------------------------------------------------------------

def _fused_single_step_kernel(x_ref, w_ref, b_ref, o_ref):
    # Whole problem resident in VMEM: one MXU pass, bias + ReLU fused into the
    # store.  No accumulator scratch, no scf.if control flow.
    o_ref[...] = jnp.maximum(
        jnp.dot(x_ref[...], w_ref[...], preferred_element_type=jnp.float32)
        + b_ref[...],
        0.0,
    )


def _fused_tiled_kernel(x_ref, w_ref, b_ref, o_ref, acc_ref):
    # Fallback for problems too large for a single VMEM-resident step.
    # Grid = (N tiles [parallel], CHW tiles [arbitrary reduction, last]).
    @pl.when(pl.program_id(1) == 0)
    def _():
        acc_ref[...] = jnp.zeros_like(acc_ref)

    acc_ref[...] += jnp.dot(
        x_ref[...], w_ref[...], preferred_element_type=jnp.float32
    )

    @pl.when(pl.program_id(1) == pl.num_programs(1) - 1)
    def _():
        o_ref[...] = jnp.maximum(acc_ref[...] + b_ref[...], 0.0)  # bias + ReLU


# --------------------------------------------------------------------------
# Parameter packing (one-time, outside the hot path)
# --------------------------------------------------------------------------

def pack_ensemble_params(weights, biases):
    """Fuse K per-extractor params into a single wide matmul operand, once.

    weights: (K, CHW, D) f32 -> (CHW, K*D) bf16, with W_fused[:, k*D:(k+1)*D]
    == weights[k].  biases: (K, D) f32 -> (1, K*D) f32.
    """
    K, CHW, D = weights.shape
    w_fused = (
        jnp.transpose(weights, (1, 0, 2)).reshape(CHW, K * D).astype(jnp.bfloat16)
    )
    b_fused = biases.reshape(1, K * D).astype(jnp.float32)
    return w_fused, b_fused


# --------------------------------------------------------------------------
# Host-side wrapper
# --------------------------------------------------------------------------

# Conservative budget vs. the smallest generation (v7x: 64 MiB physical,
# 32 MiB default scoped VMEM).
_SINGLE_STEP_VMEM_BUDGET = 24 * 1024 * 1024
_TILED_VMEM_BUDGET = 24 * 1024 * 1024


def _tiled_path(x_flat, w_fused, b_fused, Bp):
    """Size-conditional fallback: tiled matmul with a VMEM f32 accumulator."""
    CHW, N = w_fused.shape
    tn = min(512, _round_up(N, 128))
    tk = min(2048, _round_up(CHW, 128))

    def vmem_use(tk_, tn_):
        # 2x double-buffered bf16 input tiles + f32 output tile + f32 acc + bias.
        return 2 * (Bp * tk_ + tk_ * tn_) * 2 + 2 * (Bp * tn_) * 4 + tn_ * 4

    while tk > 128 and vmem_use(tk, tn) > _TILED_VMEM_BUDGET:
        tk //= 2

    CHWp = _round_up(CHW, tk)
    Np = _round_up(N, tn)

    if CHWp != CHW:
        x_flat = jnp.pad(x_flat, ((0, 0), (0, CHWp - CHW)))
    w_p = w_fused
    b_p = b_fused
    if CHWp != CHW or Np != N:
        w_p = jnp.zeros((CHWp, Np), jnp.bfloat16).at[:CHW, :N].set(w_fused)
    if Np != N:
        b_p = jnp.zeros((1, Np), jnp.float32).at[:, :N].set(b_fused)

    n_steps = Np // tn
    grid = (n_steps, CHWp // tk)  # reduction axis (CHW) last

    cost = pl.CostEstimate(
        flops=2 * Bp * CHWp * Np,
        transcendentals=0,
        # x tile is re-fetched once per N step; weights streamed once.
        bytes_accessed=(
            2 * (Bp * CHWp * n_steps + CHWp * Np) + 4 * (Np + Bp * Np)
        ),
    )

    return pl.pallas_call(
        _fused_tiled_kernel,
        out_shape=jax.ShapeDtypeStruct((Bp, Np), jnp.float32),
        grid_spec=pltpu.PrefetchScalarGridSpec(
            num_scalar_prefetch=0,
            grid=grid,
            in_specs=[
                pl.BlockSpec((Bp, tk), lambda j, k: (0, k)),   # activations
                pl.BlockSpec((tk, tn), lambda j, k: (k, j)),   # fused weights
                pl.BlockSpec((1, tn), lambda j, k: (0, j)),    # fused bias
            ],
            out_specs=pl.BlockSpec((Bp, tn), lambda j, k: (0, j)),
            scratch_shapes=[pltpu.VMEM((Bp, tn), jnp.float32)],
        ),
        compiler_params=pltpu.CompilerParams(
            dimension_semantics=("parallel", "arbitrary"),
        ),
        cost_estimate=cost,
    )(x_flat, w_p, b_p)


def ensemble_feature_extractor_apply(x_nchw, w_fused, b_fused, K):
    """x_nchw: (B, C, H, W); w_fused: (CHW, K*D) bf16; b_fused: (1, K*D) f32.

    Returns (K*B, D) float32, equivalent to
    torch.cat([relu(flatten(x) @ W_k + b_k).squeeze() for k in range(K)], 0).
    """
    B = x_nchw.shape[0]
    CHW, N = w_fused.shape
    D = N // K

    x_flat = x_nchw.reshape(B, CHW).astype(jnp.bfloat16)

    # bf16 vregs pack 16 sublanes -> pad the batch axis (only) to 16 rows.
    Bp = max(16, _round_up(B, 16))
    if Bp != B:
        x_flat = jnp.pad(x_flat, ((0, Bp - B), (0, 0)))

    single_step_bytes = 2 * (Bp * CHW + CHW * N) + 4 * (N + Bp * N)

    if single_step_bytes <= _SINGLE_STEP_VMEM_BUDGET:
        # Fast path: one grid-less call, everything resident in VMEM.
        cost = pl.CostEstimate(
            flops=2 * Bp * CHW * N,
            transcendentals=0,
            bytes_accessed=single_step_bytes,
        )
        out = pl.pallas_call(
            _fused_single_step_kernel,
            out_shape=jax.ShapeDtypeStruct((Bp, N), jnp.float32),
            cost_estimate=cost,
        )(x_flat, w_fused, b_fused)
    else:
        out = _tiled_path(x_flat, w_fused, b_fused, Bp)

    # Undo padding and reorder to torch.cat(..., dim=0) layout:
    # (B, K*D) -> (B, K, D) -> (K, B, D) -> (K*B, D).
    out = out[:B, :N].reshape(B, K, D)
    out = jnp.transpose(out, (1, 0, 2)).reshape(K * B, D)
    # TODO(synk): torch's .squeeze() yields a 1-D (K*D,) tensor when B == 1;
    # we keep (K*B, D), which matches torch semantics for all B > 1.
    return out


def ensemble_feature_extractor(x_nchw, weights, biases):
    """Convenience wrapper: packs params per call (prefer pre-packing)."""
    K = weights.shape[0]
    w_fused, b_fused = pack_ensemble_params(weights, biases)
    return ensemble_feature_extractor_apply(x_nchw, w_fused, b_fused, K)


# --------------------------------------------------------------------------
# Reference & test
# --------------------------------------------------------------------------

def reference(x_nchw, weights, biases):
    # Pure-JAX reference using the same bf16-rounded operands, f32 accumulate.
    B = x_nchw.shape[0]
    K, CHW, D = weights.shape
    x_flat = x_nchw.reshape(B, CHW).astype(jnp.bfloat16).astype(jnp.float32)
    w = weights.astype(jnp.bfloat16).astype(jnp.float32)
    feats = [
        jnp.maximum(x_flat @ w[k] + biases[k].astype(jnp.float32), 0.0)
        for k in range(K)
    ]
    return jnp.concatenate(feats, axis=0)


if __name__ == "__main__":
    # Small shapes consistent with an image feature-extractor ensemble.
    B, C, H, W = 2, 4, 16, 16
    D = 128          # per-extractor feature dim
    K = 3            # number of extractors in the ensemble
    CHW = C * H * W  # 1024

    key = jax.random.PRNGKey(0)
    kx, kw, kb = jax.random.split(key, 3)
    x = jax.random.normal(kx, (B, C, H, W), dtype=jnp.float32)
    # Deterministic synthetic parameters (no checkpoint load).
    weights = 0.02 * jax.random.normal(kw, (K, CHW, D), dtype=jnp.float32)
    biases = 0.1 * jax.random.normal(kb, (K, D), dtype=jnp.float32)

    # One-time parameter packing, hoisted out of the per-call hot path.
    w_fused, b_fused = pack_ensemble_params(weights, biases)
    w_fused, b_fused = jax.block_until_ready((w_fused, b_fused))

    apply_fn = jax.jit(
        functools.partial(ensemble_feature_extractor_apply, K=K)
    )
    out = apply_fn(x, w_fused, b_fused)
    out = jax.block_until_ready(out)

    ref = reference(x, weights, biases)
    assert out.shape == (K * B, D), out.shape
    assert jnp.allclose(out, ref, atol=1e-3, rtol=1e-3), float(
        jnp.max(jnp.abs(out - ref))
    )

    print("KERNEL_OK")
</pallas_src>

<mosaic_0001>
module attributes {stable_mosaic.version = 11 : i64} {
  func.func @_fused_single_step_kernel(%arg0: memref<16x1024xbf16, #tpu.memory_space<vmem>>, %arg1: memref<1024x384xbf16, #tpu.memory_space<vmem>>, %arg2: memref<1x384xf32, #tpu.memory_space<vmem>>, %arg3: memref<16x384xf32, #tpu.memory_space<vmem>>) attributes {dimension_semantics = [], scalar_prefetch = 0 : i64, scratch_operands = 0 : i64, tpu.core_type = #tpu.core_type<tc>} {
    %c0 = arith.constant 0 : index
    %c0_0 = arith.constant 0 : index
    %0 = vector.load %arg0[%c0, %c0_0] : memref<16x1024xbf16, #tpu.memory_space<vmem>>, vector<16x1024xbf16>
    %c0_1 = arith.constant 0 : index
    %c0_2 = arith.constant 0 : index
    %1 = vector.load %arg1[%c0_1, %c0_2] : memref<1024x384xbf16, #tpu.memory_space<vmem>>, vector<1024x384xbf16>
    %cst = arith.constant dense<0.000000e+00> : vector<16x384xf32>
    %2 = tpu.matmul %0, %1, %cst {dimension_numbers = #tpu.dot_dimension_numbers<[1], [0], [0], [1], [0, 0, 1, 1], [], []>} : vector<16x1024xbf16>, vector<1024x384xbf16>, vector<16x384xf32> -> vector<16x384xf32>
    %c0_3 = arith.constant 0 : index
    %c0_4 = arith.constant 0 : index
    %3 = vector.load %arg2[%c0_3, %c0_4] : memref<1x384xf32, #tpu.memory_space<vmem>>, vector<1x384xf32>
    %4 = vector.broadcast %3 : vector<1x384xf32> to vector<16x384xf32>
    %5 = arith.addf %2, %4 : vector<16x384xf32>
    %cst_5 = arith.constant 0.000000e+00 : f32
    %6 = vector.broadcast %cst_5 : f32 to vector<16x384xf32>
    %7 = arith.maximumf %5, %6 : vector<16x384xf32>
    %c0_6 = arith.constant 0 : index
    %c0_7 = arith.constant 0 : index
    %8 = vector.load %arg3[%c0_6, %c0_7] : memref<16x384xf32, #tpu.memory_space<vmem>>, vector<16x384xf32>
    tpu.vector_store %arg3[%c0_6, %c0_7], %7 {strides = array<i32>} : memref<16x384xf32, #tpu.memory_space<vmem>>, vector<16x384xf32>,
    return
  }
}

</mosaic_0001>

<bundles_post_ra>
// kernel: ensemble_feature_extractor_apply.1
= control target key start
LH: loop header
LB: loop body
LE: loop exit
PB: predicated region body
PF: predicated region fallthrough
CT: control target
= control target key end

     0   :  { %8 = vsyncpa [#allocation3], 0  ;;  %s2748_s15 = smov [#allocation2]   ;;  %s2749_s17 = smov 192   ;;  %s2888_s0 = inlined_call_operand.vmem [shape: bf16[16,1024], index: 0, kind: input, shape index: {}]   ;;  %s2889_s1 = inlined_call_operand.hbm [shape: bf16[1024,384], index: 1, kind: input, shape index: {}]   ;;  %s2890_s2 = inlined_call_operand.vmem [shape: f32[1,384], index: 2, kind: input, shape index: {}]   ;;  %s2891_s3 = inlined_call_operand.vmem [shape: f32[16,384], index: 3, kind: output, shape index: {}]  }
   0x1   :  { %s15_s14 = sshll.u32 %s2889_s1, 4  ;;  %s17_s16 = sshll.u32 %s2748_s15, 4  ;;  %s16_s14 = int_to_ptr.hbm [resolvable:$true] %s15_s14  ;;  %s18_s16 = int_to_ptr.vmem [resolvable:$true] %s17_s16 }
   0x2   :  { %s2750_s18 = smov 12  }
   0x3   :  { %23 = dma.hbm_to_vmem [thread:$0]  %s16_s14, 24576, %s18_s16, [#allocation3], %s2749_s17, %s2749_s17, %s2750_s18  }
   0x4   :  { %2746 = dma.done.wait [#allocation3], 24576  }
   0x5   :  { %2747 = vsyncadd [#allocation3], 4294942720  ;;  %v1837_v0 = vld [vmem:[#allocation2 + $0xa8] sm:$0xf]  ;;  %v2549_v1 = vld [vmem:[#allocation2 + $0xb0] sm:$0xf0] }
   0x6   :  { %v1933_v2 = vld [vmem:[#allocation2 + $0x168] sm:$0xf]  ;;  %v1838_v3 = vor.u32 %v2549_v1, %v1837_v0  ;;  %v2573_v4 = vld [vmem:[#allocation2 + $0x170] sm:$0xf0]  ;;  %v1825_v11 = vld [vmem:[#allocation2 + $0x90] sm:$0xf] }
   0x7   :  { %v2029_v5 = vld [vmem:[#allocation2 + $0x228] sm:$0xf]  ;;  %v2597_v6 = vld [vmem:[#allocation2 + $0x230] sm:$0xf0]  ;;  %v1934_v7 = vor.u32 %v2573_v4, %v1933_v2  ;;  %v2546_v13 = vld [vmem:[#allocation2 + $0x98] sm:$0xf0] }
   0x8   :  { %v2030_v8 = vor.u32 %v2597_v6, %v2029_v5  ;;  %v2125_v9 = vld [vmem:[#allocation2 + $0x2e8] sm:$0xf]  ;;  %v2621_v10 = vld [vmem:[#allocation2 + $0x2f0] sm:$0xf0]  ;;  %1366 = vmatpush.bf16.msra.mxu0 %v1838_v3  ;;  %v1921_v14 = vld [vmem:[#allocation2 + $0x150] sm:$0xf]  ;;  %v1826_v16 = vor.u32 %v2546_v13, %v1825_v11 }
   0x9   :  { %v2126_v12 = vor.u32 %v2621_v10, %v2125_v9  ;;  %v2570_v15 = vld [vmem:[#allocation2 + $0x158] sm:$0xf0]  ;;  %1380 = vmatpush.bf16.msra.mxu1 %v1934_v7  ;;  %v2017_v18 = vld [vmem:[#allocation2 + $0x210] sm:$0xf]  ;;  %v1813_v23 = vld [vmem:[#allocation2 + $0x78] sm:$0xf] }
   0xa   :  { %1394 = vmatpush.bf16.msra.mxu2 %v2030_v8  ;;  %v1922_v17 = vor.u32 %v2570_v15, %v1921_v14  ;;  %v2594_v19 = vld [vmem:[#allocation2 + $0x218] sm:$0xf0]  ;;  %v2113_v20 = vld [vmem:[#allocation2 + $0x2d0] sm:$0xf]  ;;  %v2543_v24 = vld [vmem:[#allocation2 + $0x80] sm:$0xf0] }
   0xb   :  { %1408 = vmatpush.bf16.msra.mxu3 %v2126_v12  ;;  %v2018_v21 = vor.u32 %v2594_v19, %v2017_v18  ;;  %v2618_v22 = vld [vmem:[#allocation2 + $0x2d8] sm:$0xf0]  ;;  %v1909_v26 = vld [vmem:[#allocation2 + $0x138] sm:$0xf]  ;;  %v2567_v27 = vld [vmem:[#allocation2 + $0x140] sm:$0xf0]  ;;  %v1814_v29 = vor.u32 %v2543_v24, %v1813_v23 }
   0xc   :  { %v2114_v25 = vor.u32 %v2618_v22, %v2113_v20  ;;  %v2005_v28 = vld [vmem:[#allocation2 + $0x1f8] sm:$0xf]  ;;  %1367 = vmatpush.bf16.msra.mxu0 %v1826_v16  ;;  %v2591_v30 = vld [vmem:[#allocation2 + $0x200] sm:$0xf0]  ;;  %v1910_v33 = vor.u32 %v2567_v27, %v1909_v26  ;;  %v1801_v35 = vld [vmem:[#allocation2 + $0x60] sm:$0xf] }
   0xd   :  { %v2101_v31 = vld [vmem:[#allocation2 + $0x2b8] sm:$0xf]  ;;  %v2615_v32 = vld [vmem:[#allocation2 + $0x2c0] sm:$0xf0]  ;;  %1381 = vmatpush.bf16.msra.mxu1 %v1922_v17  ;;  %v2006_v34 = vor.u32 %v2591_v30, %v2005_v28  ;;  %v2540_v36 = vld [vmem:[#allocation2 + $0x68] sm:$0xf0] }
   0xe   :  { %1395 = vmatpush.bf16.msra.mxu2 %v2018_v21  ;;  %v1897_v37 = vld [vmem:[#allocation2 + $0x120] sm:$0xf]  ;;  %v2102_v38 = vor.u32 %v2615_v32, %v2101_v31  ;;  %v2564_v39 = vld [vmem:[#allocation2 + $0x128] sm:$0xf0]  ;;  %v1802_v44 = vor.u32 %v2540_v36, %v1801_v35  ;;  %v1789_v47 = vld [vmem:[#allocation2 + $0x48] sm:$0xf] }
   0xf   :  { %1409 = vmatpush.bf16.msra.mxu3 %v2114_v25  ;;  %v1993_v40 = vld [vmem:[#allocation2 + $0x1e0] sm:$0xf]  ;;  %v2588_v41 = vld [vmem:[#allocation2 + $0x1e8] sm:$0xf0]  ;;  %v1898_v45 = vor.u32 %v2564_v39, %v1897_v37  ;;  %v2537_v48 = vld [vmem:[#allocation2 + $0x50] sm:$0xf0] }
  0x10   :  { %v2089_v42 = vld [vmem:[#allocation2 + $0x2a0] sm:$0xf]  ;;  %v2612_v43 = vld [vmem:[#allocation2 + $0x2a8] sm:$0xf0]  ;;  %1368 = vmatpush.bf16.msra.mxu0 %v1814_v29  ;;  %v1994_v46 = vor.u32 %v2588_v41, %v1993_v40  ;;  %v1885_v49 = vld [vmem:[#allocation2 + $0x108] sm:$0xf]  ;;  %v1790_v56 = vor.u32 %v2537_v48, %v1789_v47 }
  0x11   :  { %1382 = vmatpush.bf16.msra.mxu1 %v1910_v33  ;;  %v2090_v50 = vor.u32 %v2612_v43, %v2089_v42  ;;  %v2561_v51 = vld [vmem:[#allocation2 + $0x110] sm:$0xf0]  ;;  %v1981_v52 = vld [vmem:[#allocation2 + $0x1c8] sm:$0xf]  ;;  %v1777_v59 = vld [vmem:[#allocation2 + $0x30] sm:$0xf] }
  0x12   :  { %1396 = vmatpush.bf16.msra.mxu2 %v2006_v34  ;;  %v2585_v53 = vld [vmem:[#allocation2 + $0x1d0] sm:$0xf0]  ;;  %v2077_v54 = vld [vmem:[#allocation2 + $0x288] sm:$0xf]  ;;  %v1886_v57 = vor.u32 %v2561_v51, %v1885_v49  ;;  %v2534_v60 = vld [vmem:[#allocation2 + $0x38] sm:$0xf0] }
  0x13   :  { %1410 = vmatpush.bf16.msra.mxu3 %v2102_v38  ;;  %v2609_v55 = vld [vmem:[#allocation2 + $0x290] sm:$0xf0]  ;;  %v1982_v58 = vor.u32 %v2585_v53, %v1981_v52  ;;  %v1873_v61 = vld [vmem:[#allocation2 + $0xf0] sm:$0xf]  ;;  %v2558_v63 = vld [vmem:[#allocation2 + $0xf8] sm:$0xf0]  ;;  %v1778_v4 = vor.u32 %v2534_v60, %v1777_v59 }
  0x14   :  { %1369 = vmatpush.bf16.msra.mxu0 %v1802_v44  ;;  %v2078_v62 = vor.u32 %v2609_v55, %v2077_v54  ;;  %v1969_v0 = vld [vmem:[#allocation2 + $0x1b0] sm:$0xf]  ;;  %v2582_v1 = vld [vmem:[#allocation2 + $0x1b8] sm:$0xf0]  ;;  %v1874_v5 = vor.u32 %v2558_v63, %v1873_v61  ;;  %v1765_v7 = vld [vmem:[#allocation2 + $0x18] sm:$0xf] }
  0x15   :  { %1383 = vmatpush.bf16.msra.mxu1 %v1898_v45  ;;  %v2065_v2 = vld [vmem:[#allocation2 + $0x270] sm:$0xf]  ;;  %v2606_v3 = vld [vmem:[#allocation2 + $0x278] sm:$0xf0]  ;;  %v1970_v6 = vor.u32 %v2582_v1, %v1969_v0  ;;  %v2531_v8 = vld [vmem:[#allocation2 + $0x20] sm:$0xf0] }
  0x16   :  { %1397 = vmatpush.bf16.msra.mxu2 %v1994_v46  ;;  %v1861_v9 = vld [vmem:[#allocation2 + $0xd8] sm:$0xf]  ;;  %v2066_v10 = vor.u32 %v2606_v3, %v2065_v2  ;;  %v2555_v11 = vld [vmem:[#allocation2 + $0xe0] sm:$0xf0]  ;;  %v1766_v16 = vor.u32 %v2531_v8, %v1765_v7  ;;  %v1753_v17 = vld [vmem:[#allocation2] sm:$0xf] }
  0x17   :  { %1411 = vmatpush.bf16.msra.mxu3 %v2090_v50  ;;  %v1957_v12 = vld [vmem:[#allocation2 + $0x198] sm:$0xf]  ;;  %v2579_v13 = vld [vmem:[#allocation2 + $0x1a0] sm:$0xf0]  ;;  %v2528_v18 = vld [vmem:[#allocation2 + $0x8] sm:$0xf0]  ;;  %v1862_v19 = vor.u32 %v2555_v11, %v1861_v9 }
  0x18   :  { %1370 = vmatpush.bf16.msra.mxu0 %v1790_v56  ;;  %v2053_v14 = vld [vmem:[#allocation2 + $0x258] sm:$0xf]  ;;  %v2603_v15 = vld [vmem:[#allocation2 + $0x260] sm:$0xf0]  ;;  %v1958_v20 = vor.u32 %v2579_v13, %v1957_v12  ;;  %v1849_v21 = vld [vmem:[#allocation2 + $0xc0] sm:$0xf]  ;;  %v1754_v31 = vor.u32 %v2528_v18, %v1753_v17 }
  0x19   :  { %1384 = vmatpush.bf16.msra.mxu1 %v1886_v57  ;;  %v2552_v22 = vld [vmem:[#allocation2 + $0xc8] sm:$0xf0]  ;;  %v1945_v23 = vld [vmem:[#allocation2 + $0x180] sm:$0xf]  ;;  %v2054_v24 = vor.u32 %v2603_v15, %v2053_v14  ;;  %v2221_v28 = vld [vmem:[#allocation2 + $0x3a8] sm:$0xf] }
  0x1a   :  { %1398 = vmatpush.bf16.msra.mxu2 %v1982_v58  ;;  %v2576_v25 = vld [vmem:[#allocation2 + $0x188] sm:$0xf0]  ;;  %v2041_v26 = vld [vmem:[#allocation2 + $0x240] sm:$0xf]  ;;  %v2645_v29 = vld [vmem:[#allocation2 + $0x3b0] sm:$0xf0]  ;;  %v1850_v35 = vor.u32 %v2552_v22, %v1849_v21 }
  0x1b   :  { %1412 = vmatpush.bf16.msra.mxu3 %v2078_v62  ;;  %v2600_v27 = vld [vmem:[#allocation2 + $0x248] sm:$0xf0]  ;;  %v2317_v30 = vld [vmem:[#allocation2 + $0x468] sm:$0xf]  ;;  %v2669_v32 = vld [vmem:[#allocation2 + $0x470] sm:$0xf0]  ;;  %v1946_v36 = vor.u32 %v2576_v25, %v1945_v23  ;;  %v2222_v40 = vor.u32 %v2645_v29, %v2221_v28 }
  0x1c   :  { %1371 = vmatpush.bf16.msra.mxu0 %v1778_v4  ;;  %v2413_v33 = vld [vmem:[#allocation2 + $0x528] sm:$0xf]  ;;  %v2693_v34 = vld [vmem:[#allocation2 + $0x530] sm:$0xf0]  ;;  %v2042_v39 = vor.u32 %v2600_v27, %v2041_v26  ;;  %v2209_v41 = vld [vmem:[#allocation2 + $0x390] sm:$0xf]  ;;  %v2318_v43 = vor.u32 %v2669_v32, %v2317_v30 }
  0x1d   :  { %1385 = vmatpush.bf16.msra.mxu1 %v1874_v5  ;;  %v2509_v37 = vld [vmem:[#allocation2 + $0x5e8] sm:$0xf]  ;;  %v2717_v38 = vld [vmem:[#allocation2 + $0x5f0] sm:$0xf0]  ;;  %v2642_v42 = vld [vmem:[#allocation2 + $0x398] sm:$0xf0]  ;;  %v2414_v44 = vor.u32 %v2693_v34, %v2413_v33 }
  0x1e   :  { %1399 = vmatpush.bf16.msra.mxu2 %v1970_v6  ;;  %v2305_v45 = vld [vmem:[#allocation2 + $0x450] sm:$0xf]  ;;  %v2666_v46 = vld [vmem:[#allocation2 + $0x458] sm:$0xf0]  ;;  %v2510_v48 = vor.u32 %v2717_v38, %v2509_v37  ;;  %v1721_v52 = vld [vmem:[%s2888_s0] sm:$0xf]  ;;  %v2210_v55 = vor.u32 %v2642_v42, %v2209_v41 }
  0x1f   :  { %1413 = vmatpush.bf16.msra.mxu3 %v2066_v10  ;;  %v2401_v47 = vld [vmem:[#allocation2 + $0x510] sm:$0xf]  ;;  %v2690_v49 = vld [vmem:[#allocation2 + $0x518] sm:$0xf0]  ;;  %v2523_v53 = vld [vmem:[%s2888_s0 + $0x1c] sm:$0xf0]  ;;  %v2306_v60 = vor.u32 %v2666_v46, %v2305_v45 }
  0x20   :  { %1372 = vmatpush.bf16.msra.mxu0 %v1766_v16  ;;  %v2497_v50 = vld [vmem:[#allocation2 + $0x5d0] sm:$0xf]  ;;  %v2714_v51 = vld [vmem:[#allocation2 + $0x5d8] sm:$0xf0]  ;;  %v1729_v54 = vld [vmem:[%s2888_s0 + $0x8] sm:$0xf]  ;;  %v2783_v58 = vor.u32 %v2523_v53, %v1721_v52  ;;  %v2402_v61 = vor.u32 %v2690_v49, %v2401_v47 }
  0x21   :  { %1386 = vmatpush.bf16.msra.mxu1 %v1862_v19  ;;  %v2197_v56 = vld [vmem:[#allocation2 + $0x378] sm:$0xf]  ;;  %v2639_v57 = vld [vmem:[#allocation2 + $0x380] sm:$0xf0]  ;;  %v2524_v59 = vld [vmem:[%s2888_s0 + $0x24] sm:$0xf0]  ;;  %v2498_v2 = vor.u32 %v2714_v51, %v2497_v50 }
  0x22   :  { %1400 = vmatpush.bf16.msra.mxu2 %v1958_v20  ;;  %v2293_v62 = vld [vmem:[#allocation2 + $0x438] sm:$0xf]  ;;  %v2663_v63 = vld [vmem:[#allocation2 + $0x440] sm:$0xf0]  ;;  %v2788_v1 = vor.u32 %v2524_v59, %v1729_v54  ;;  %v2520_v8 = vld [vmem:[%s2888_s0 + $0xc] sm:$0xf]  ;;  %v2198_v9 = vor.u32 %v2639_v57, %v2197_v56 }
  0x23   :  { %1414 = vmatpush.bf16.msra.mxu3 %v2054_v24  ;;  %v2389_v0 = vld [vmem:[#allocation2 + $0x4f8] sm:$0xf]  ;;  %v2687_v3 = vld [vmem:[#allocation2 + $0x500] sm:$0xf0]  ;;  %v1731_v11 = vld [vmem:[%s2888_s0 + $0x28] sm:$0xf0]  ;;  %v2294_v12 = vor.u32 %v2663_v63, %v2293_v62 }
  0x24   :  { %1373 = vmatpush.bf16.msra.mxu0 %v1754_v31  ;;  %v2485_v4 = vld [vmem:[#allocation2 + $0x5b8] sm:$0xf]  ;;  %v2711_v5 = vld [vmem:[#allocation2 + $0x5c0] sm:$0xf0]  ;;  %v2390_v13 = vor.u32 %v2687_v3, %v2389_v0  ;;  %v2185_v14 = vld [vmem:[#allocation2 + $0x360] sm:$0xf]  ;;  %v2806_v17 = vor.u32 %v2520_v8, %v1731_v11 }
  0x25   :  { %1387 = vmatpush.bf16.msra.mxu1 %v1850_v35  ;;  %v2519_v6 = vld [vmem:[%s2888_s0 + $0x4] sm:$0xf]  ;;  %v2636_v15 = vld [vmem:[#allocation2 + $0x368] sm:$0xf0]  ;;  %v2281_v16 = vld [vmem:[#allocation2 + $0x420] sm:$0xf]  ;;  %v2486_v18 = vor.u32 %v2711_v5, %v2485_v4 }
  0x26   :  { %1401 = vmatpush.bf16.msra.mxu2 %v1946_v36  ;;  %v1723_v7 = vld [vmem:[%s2888_s0 + $0x20] sm:$0xf0]  ;;  %v2660_v19 = vld [vmem:[#allocation2 + $0x428] sm:$0xf0]  ;;  %v2377_v20 = vld [vmem:[#allocation2 + $0x4e0] sm:$0xf]  ;;  %v2186_v24 = vor.u32 %v2636_v15, %v2185_v14 }
  0x27   :  { %1415 = vmatpush.bf16.msra.mxu3 %v2042_v39  ;;  %1374 = vmatmul.bf16.vlgmr.msra.gmra.mxu0 %v2783_v58  ;;  %v2801_v10 = vor.u32 %v2519_v6, %v1723_v7  ;;  %v2684_v21 = vld [vmem:[#allocation2 + $0x4e8] sm:$0xf0]  ;;  %v2473_v22 = vld [vmem:[#allocation2 + $0x5a0] sm:$0xf]  ;;  %v2282_v25 = vor.u32 %v2660_v19, %v2281_v16  ;;  %v2173_v27 = vld [vmem:[#allocation2 + $0x348] sm:$0xf] }
  0x28   :  { %1422 = vmatpush.bf16.msrb.mxu0 %v2222_v40  ;;  %v2708_v23 = vld [vmem:[#allocation2 + $0x5a8] sm:$0xf0]  ;;  %v2378_v26 = vor.u32 %v2684_v21, %v2377_v20  ;;  %v2633_v28 = vld [vmem:[#allocation2 + $0x350] sm:$0xf0]  ;;  %v2269_v29 = vld [vmem:[#allocation2 + $0x408] sm:$0xf] }
  0x29   :  { %1436 = vmatpush.bf16.msrb.mxu1 %v2318_v43  ;;  %1402 = vmatmul.bf16.vlgmr.msra.gmra.mxu2 %v2788_v1  ;;  %v2474_v30 = vor.u32 %v2708_v23, %v2473_v22  ;;  %v2657_v31 = vld [vmem:[#allocation2 + $0x410] sm:$0xf0]  ;;  %v2365_v32 = vld [vmem:[#allocation2 + $0x4c8] sm:$0xf]  ;;  %v2174_v36 = vor.u32 %v2633_v28, %v2173_v27  ;;  %v2161_v39 = vld [vmem:[#allocation2 + $0x330] sm:$0xf] }
  0x2a   :  { %1450 = vmatpush.bf16.msrb.mxu2 %v2414_v44  ;;  %1388 = vmatmul.bf16.vlgmr.msra.gmra.mxu1 %v2801_v10  ;;  %v2681_v33 = vld [vmem:[#allocation2 + $0x4d0] sm:$0xf0]  ;;  %v2461_v34 = vld [vmem:[#allocation2 + $0x588] sm:$0xf]  ;;  %v2270_v37 = vor.u32 %v2657_v31, %v2269_v29  ;;  %v2630_v40 = vld [vmem:[#allocation2 + $0x338] sm:$0xf0] }
  0x2b   :  { %1464 = vmatpush.bf16.msrb.mxu3 %v2510_v48  ;;  %v2705_v35 = vld [vmem:[#allocation2 + $0x590] sm:$0xf0]  ;;  %v2366_v38 = vor.u32 %v2681_v33, %v2365_v32  ;;  %v2257_v41 = vld [vmem:[#allocation2 + $0x3f0] sm:$0xf]  ;;  %v2654_v43 = vld [vmem:[#allocation2 + $0x3f8] sm:$0xf0]  ;;  %v2162_v48 = vor.u32 %v2630_v40, %v2161_v39 }
  0x2c   :  { %1423 = vmatpush.bf16.msrb.mxu0 %v2210_v55  ;;  %1416 = vmatmul.bf16.vlgmr.msra.gmra.mxu3 %v2806_v17  ;;  %v2462_v42 = vor.u32 %v2705_v35, %v2461_v34  ;;  %v2353_v44 = vld [vmem:[#allocation2 + $0x4b0] sm:$0xf]  ;;  %v2678_v45 = vld [vmem:[#allocation2 + $0x4b8] sm:$0xf0]  ;;  %v2149_v49 = vld [vmem:[#allocation2 + $0x318] sm:$0xf]  ;;  %v2258_v50 = vor.u32 %v2654_v43, %v2257_v41 }
  0x2d   :  { %1437 = vmatpush.bf16.msrb.mxu1 %v2306_v60  ;;  %v2449_v46 = vld [vmem:[#allocation2 + $0x570] sm:$0xf]  ;;  %v2702_v47 = vld [vmem:[#allocation2 + $0x578] sm:$0xf0]  ;;  %v2354_v51 = vor.u32 %v2678_v45, %v2353_v44  ;;  %v2627_v52 = vld [vmem:[#allocation2 + $0x320] sm:$0xf0] }
  0x2e   :  { %1451 = vmatpush.bf16.msrb.mxu2 %v2402_v61  ;;  %v2245_v53 = vld [vmem:[#allocation2 + $0x3d8] sm:$0xf]  ;;  %v2651_v54 = vld [vmem:[#allocation2 + $0x3e0] sm:$0xf0]  ;;  %v2450_v55 = vor.u32 %v2702_v47, %v2449_v46  ;;  %v2137_v61 = vld [vmem:[#allocation2 + $0x300] sm:$0xf]  ;;  %v2150_v63 = vor.u32 %v2627_v52, %v2149_v49 }
  0x2f   :  { %1465 = vmatpush.bf16.msrb.mxu3 %v2498_v2  ;;  %v2341_v56 = vld [vmem:[#allocation2 + $0x498] sm:$0xf]  ;;  %v2675_v57 = vld [vmem:[#allocation2 + $0x4a0] sm:$0xf0]  ;;  %v2624_v62 = vld [vmem:[#allocation2 + $0x308] sm:$0xf0]  ;;  %v2246_v5 = vor.u32 %v2651_v54, %v2245_v53 }
  0x30   :  { %1424 = vmatpush.bf16.msrb.mxu0 %v2198_v9  ;;  %v2437_v59 = vld [vmem:[#allocation2 + $0x558] sm:$0xf]  ;;  %v2699_v60 = vld [vmem:[#allocation2 + $0x560] sm:$0xf0]  ;;  %v2233_v0 = vld [vmem:[#allocation2 + $0x3c0] sm:$0xf]  ;;  %v2342_v6 = vor.u32 %v2675_v57, %v2341_v56  ;;  %v2138_v19 = vor.u32 %v2624_v62, %v2137_v61 }
  0x31   :  { %1438 = vmatpush.bf16.msrb.mxu1 %v2294_v12  ;;  %v2648_v2 = vld [vmem:[#allocation2 + $0x3c8] sm:$0xf0]  ;;  %v2329_v3 = vld [vmem:[#allocation2 + $0x480] sm:$0xf]  ;;  %v2438_v11 = vor.u32 %v2699_v60, %v2437_v59  ;;  %v1839_v12 = vld [vmem:[#allocation2 + $0xb4] sm:$0xf0] }
  0x32   :  { %1452 = vmatpush.bf16.msrb.mxu2 %v2390_v13  ;;  %v2672_v4 = vld [vmem:[#allocation2 + $0x488] sm:$0xf0]  ;;  %v2425_v7 = vld [vmem:[#allocation2 + $0x540] sm:$0xf]  ;;  %v1935_v14 = vld [vmem:[#allocation2 + $0x174] sm:$0xf0]  ;;  %v2234_v23 = vor.u32 %v2648_v2, %v2233_v0 }
  0x33   :  { %1466 = vmatpush.bf16.msrb.mxu3 %v2486_v18  ;;  %v2696_v8 = vld [vmem:[#allocation2 + $0x548] sm:$0xf0]  ;;  %v2031_v16 = vld [vmem:[#allocation2 + $0x234] sm:$0xf0]  ;;  %v1737_v21 = vld [vmem:[%s2888_s0 + $0x10] sm:$0xf] }
  0x34   :  { %1425 = vmatpush.bf16.msrb.mxu0 %v2186_v24  ;;  %v2548_v9 = vld [vmem:[#allocation2 + $0xac] sm:$0xf]  ;;  %v2127_v20 = vld [vmem:[#allocation2 + $0x2f4] sm:$0xf0]  ;;  %v2525_v22 = vld [vmem:[%s2888_s0 + $0x2c] sm:$0xf0]  ;;  %v2330_v24 = vor.u32 %v2672_v4, %v2329_v3  ;;  %v2426_v28 = vor.u32 %v2696_v8, %v2425_v7 }
  0x35   :  { %1439 = vmatpush.bf16.msrb.mxu1 %v2282_v25  ;;  %v2572_v13 = vld [vmem:[#allocation2 + $0x16c] sm:$0xf]  ;;  %v1745_v25 = vld [vmem:[%s2888_s0 + $0x18] sm:$0xf]  ;;  %v2521_v27 = vld [vmem:[%s2888_s0 + $0x14] sm:$0xf]  ;;  %v1842_v29 = vor.u32 %v2548_v9, %v1839_v12  ;;  %v2834_v39 = vor.u32 %v2525_v22, %v1737_v21 }
  0x36   :  { %1453 = vmatpush.bf16.msrb.mxu2 %v2378_v26  ;;  %v2596_v15 = vld [vmem:[#allocation2 + $0x22c] sm:$0xf]  ;;  %v2526_v26 = vld [vmem:[%s2888_s0 + $0x34] sm:$0xf0]  ;;  %v2522_v31 = vld [vmem:[%s2888_s0 + $0x1c] sm:$0xf]  ;;  %v1938_v33 = vor.u32 %v2572_v13, %v1935_v14 }
  0x37   :  { %1467 = vmatpush.bf16.msrb.mxu3 %v2474_v30  ;;  %v2620_v18 = vld [vmem:[#allocation2 + $0x2ec] sm:$0xf]  ;;  %v1739_v30 = vld [vmem:[%s2888_s0 + $0x30] sm:$0xf0]  ;;  %v1747_v32 = vld [vmem:[%s2888_s0 + $0x38] sm:$0xf0]  ;;  %v2034_v34 = vor.u32 %v2596_v15, %v2031_v16  ;;  %v2836_v43 = vor.u32 %v2526_v26, %v1745_v25 }
  0x38   :  { %1426 = vmatpush.bf16.msrb.mxu0 %v2174_v36  ;;  %v2545_v35 = vld [vmem:[#allocation2 + $0x94] sm:$0xf]  ;;  %v1827_v36 = vld [vmem:[#allocation2 + $0x9c] sm:$0xf0]  ;;  %v2838_v44 = vor.u32 %v2521_v27, %v1739_v30  ;;  %v2840_v47 = vor.u32 %v2522_v31, %v1747_v32  ;;  %v1815_v52 = vld [vmem:[#allocation2 + $0x84] sm:$0xf0] }
  0x39   :  { %1440 = vmatpush.bf16.msrb.mxu1 %v2270_v37  ;;  %v2569_v37 = vld [vmem:[#allocation2 + $0x154] sm:$0xf]  ;;  %v1923_v40 = vld [vmem:[#allocation2 + $0x15c] sm:$0xf0]  ;;  %v2566_v53 = vld [vmem:[#allocation2 + $0x13c] sm:$0xf] }
  0x3a   :  { %1454 = vmatpush.bf16.msrb.mxu2 %v2366_v38  ;;  %v2130_v38 = vor.u32 %v2620_v18, %v2127_v20  ;;  %v2593_v41 = vld [vmem:[#allocation2 + $0x214] sm:$0xf]  ;;  %v2115_v46 = vld [vmem:[#allocation2 + $0x2dc] sm:$0xf0]  ;;  %v1926_v49 = vor.u32 %v2569_v37, %v1923_v40  ;;  %v2590_v56 = vld [vmem:[#allocation2 + $0x1fc] sm:$0xf] }
  0x3b   :  { %1468 = vmatpush.bf16.msrb.mxu3 %v2462_v42  ;;  %v2019_v42 = vld [vmem:[#allocation2 + $0x21c] sm:$0xf0]  ;;  %v2617_v45 = vld [vmem:[#allocation2 + $0x2d4] sm:$0xf]  ;;  %v2007_v57 = vld [vmem:[#allocation2 + $0x204] sm:$0xf0] }
  0x3c   :  { %1427 = vmatpush.bf16.msrb.mxu0 %v2162_v48  ;;  %v1830_v48 = vor.u32 %v2545_v35, %v1827_v36  ;;  %v2118_v54 = vor.u32 %v2617_v45, %v2115_v46  ;;  %v2614_v59 = vld [vmem:[#allocation2 + $0x2bc] sm:$0xf]  ;;  %v2103_v60 = vld [vmem:[#allocation2 + $0x2c4] sm:$0xf0]  ;;  %v2539_v0 = vld [vmem:[#allocation2 + $0x64] sm:$0xf] }
  0x3d   :  { %1441 = vmatpush.bf16.msrb.mxu1 %v2258_v50  ;;  %v2022_v50 = vor.u32 %v2593_v41, %v2019_v42  ;;  %v1803_v2 = vld [vmem:[#allocation2 + $0x6c] sm:$0xf0]  ;;  %v2563_v3 = vld [vmem:[#allocation2 + $0x124] sm:$0xf]  ;;  %v2106_v4 = vor.u32 %v2614_v59, %v2103_v60  ;;  %v2536_v14 = vld [vmem:[#allocation2 + $0x4c] sm:$0xf] }
  0x3e   :  { %1455 = vmatpush.bf16.msrb.mxu2 %v2354_v51  ;;  %v2542_v51 = vld [vmem:[#allocation2 + $0x7c] sm:$0xf]  ;;  %v1995_v7 = vld [vmem:[#allocation2 + $0x1ec] sm:$0xf0]  ;;  %v2611_v8 = vld [vmem:[#allocation2 + $0x2a4] sm:$0xf] }
  0x3f   :  { %1469 = vmatpush.bf16.msrb.mxu3 %v2450_v55  ;;  %v1911_v55 = vld [vmem:[#allocation2 + $0x144] sm:$0xf0]  ;;  %v1818_v61 = vor.u32 %v2542_v51, %v1815_v52  ;;  %v2091_v9 = vld [vmem:[#allocation2 + $0x2ac] sm:$0xf0]  ;;  %v1791_v15 = vld [vmem:[#allocation2 + $0x54] sm:$0xf0] }
  0x40   :  { %1428 = vmatpush.bf16.msrb.mxu0 %v2150_v63  ;;  %v1914_v62 = vor.u32 %v2566_v53, %v1911_v55  ;;  %v2010_v63 = vor.u32 %v2590_v56, %v2007_v57  ;;  %v2560_v16 = vld [vmem:[#allocation2 + $0x10c] sm:$0xf]  ;;  %v2094_v18 = vor.u32 %v2611_v8, %v2091_v9  ;;  %v1983_v21 = vld [vmem:[#allocation2 + $0x1d4] sm:$0xf0]  ;;  %v2533_v27 = vld [vmem:[#allocation2 + $0x34] sm:$0xf] }
  0x41   :  { %1442 = vmatpush.bf16.msrb.mxu1 %v2246_v5  ;;  %v1899_v5 = vld [vmem:[#allocation2 + $0x12c] sm:$0xf0]  ;;  %v2584_v20 = vld [vmem:[#allocation2 + $0x1cc] sm:$0xf]  ;;  %v1875_v31 = vld [vmem:[#allocation2 + $0xfc] sm:$0xf0] }
  0x42   :  { %1456 = vmatpush.bf16.msrb.mxu2 %v2342_v6  ;;  %v2587_v6 = vld [vmem:[#allocation2 + $0x1e4] sm:$0xf]  ;;  %v1902_v12 = vor.u32 %v2563_v3, %v1899_v5  ;;  %v2608_v22 = vld [vmem:[#allocation2 + $0x28c] sm:$0xf]  ;;  %v1986_v26 = vor.u32 %v2584_v20, %v1983_v21  ;;  %v2581_v32 = vld [vmem:[#allocation2 + $0x1b4] sm:$0xf] }
  0x43   :  { %1470 = vmatpush.bf16.msrb.mxu3 %v2438_v11  ;;  %v1806_v11 = vor.u32 %v2539_v0, %v1803_v2  ;;  %v1998_v13 = vor.u32 %v2587_v6, %v1995_v7  ;;  %v2067_v35 = vld [vmem:[#allocation2 + $0x27c] sm:$0xf0]  ;;  %v2530_v40 = vld [vmem:[#allocation2 + $0x1c] sm:$0xf]  ;;  %v1767_v41 = vld [vmem:[#allocation2 + $0x24] sm:$0xf0] }
  0x44   :  { %1429 = vmatpush.bf16.msrb.mxu0 %v2138_v19  ;;  %v1887_v19 = vld [vmem:[#allocation2 + $0x114] sm:$0xf0]  ;;  %v2554_v42 = vld [vmem:[#allocation2 + $0xdc] sm:$0xf]  ;;  %v1863_v46 = vld [vmem:[#allocation2 + $0xe4] sm:$0xf0]  ;;  %v1770_v52 = vor.u32 %v2530_v40, %v1767_v41 }
  0x45   :  { %1443 = vmatpush.bf16.msrb.mxu1 %v2234_v23  ;;  %v2079_v23 = vld [vmem:[#allocation2 + $0x294] sm:$0xf0]  ;;  %v1890_v25 = vor.u32 %v2560_v16, %v1887_v19  ;;  %v2055_v51 = vld [vmem:[#allocation2 + $0x264] sm:$0xf0]  ;;  %v2527_v53 = vld [vmem:[#allocation2 + $0x4] sm:$0xf]  ;;  %v1866_v55 = vor.u32 %v2554_v42, %v1863_v46 }
  0x46   :  { %1457 = vmatpush.bf16.msrb.mxu2 %v2330_v24  ;;  %v1794_v24 = vor.u32 %v2536_v14, %v1791_v15  ;;  %v2082_v30 = vor.u32 %v2608_v22, %v2079_v23  ;;  %v2551_v57 = vld [vmem:[#allocation2 + $0xc4] sm:$0xf]  ;;  %v1851_v59 = vld [vmem:[#allocation2 + $0xcc] sm:$0xf0]  ;;  %v2644_v2 = vld [vmem:[#allocation2 + $0x3ac] sm:$0xf] }
  0x47   :  { %1471 = vmatpush.bf16.msrb.mxu3 %v2426_v28  ;;  %1430 = vmatmul.bf16.vlgmr.msrb.gmra.mxu0 %v2834_v39  ;;  %v1779_v28 = vld [vmem:[#allocation2 + $0x3c] sm:$0xf0]  ;;  %v2575_v60 = vld [vmem:[#allocation2 + $0x184] sm:$0xf]  ;;  %v2043_v0 = vld [vmem:[#allocation2 + $0x24c] sm:$0xf0]  ;;  %v1854_v9 = vor.u32 %v2551_v57, %v1851_v59 }
  0x48   :  { %1478 = vmatpush.bf16.msra.mxu0 %v1842_v29  ;;  %1444 = vmatmul.bf16.vlgmr.msrb.gmra.mxu1 %v2838_v44  ;;  %v2557_v29 = vld [vmem:[#allocation2 + $0xf4] sm:$0xf]  ;;  %v1782_v36 = vor.u32 %v2533_v27, %v1779_v28  ;;  %v2223_v3 = vld [vmem:[#allocation2 + $0x3b4] sm:$0xf0]  ;;  %v2692_v7 = vld [vmem:[#allocation2 + $0x52c] sm:$0xf] }
  0x49   :  { %1492 = vmatpush.bf16.msra.mxu1 %v1938_v33  ;;  %1458 = vmatmul.bf16.vlgmr.msrb.gmra.mxu2 %v2836_v43  ;;  %v1971_v33 = vld [vmem:[#allocation2 + $0x1bc] sm:$0xf0]  ;;  %v1878_v37 = vor.u32 %v2557_v29, %v1875_v31  ;;  %v2319_v6 = vld [vmem:[#allocation2 + $0x474] sm:$0xf0]  ;;  %v2226_v15 = vor.u32 %v2644_v2, %v2223_v3  ;;  %v2641_v19 = vld [vmem:[#allocation2 + $0x394] sm:$0xf] }
  0x4a   :  { %1506 = vmatpush.bf16.msra.mxu2 %v2034_v34  ;;  %1472 = vmatmul.bf16.vlgmr.msrb.gmra.mxu3 %v2840_v47  ;;  %v2605_v34 = vld [vmem:[#allocation2 + $0x274] sm:$0xf]  ;;  %v2415_v8 = vld [vmem:[#allocation2 + $0x534] sm:$0xf0]  ;;  %v2211_v20 = vld [vmem:[#allocation2 + $0x39c] sm:$0xf0] }
  0x4b   :  { %1520 = vmatpush.bf16.msra.mxu3 %v2130_v38  ;;  %v1974_v38 = vor.u32 %v2581_v32, %v1971_v33  ;;  %v2070_v45 = vor.u32 %v2605_v34, %v2067_v35  ;;  %v2665_v21 = vld [vmem:[#allocation2 + $0x454] sm:$0xf]  ;;  %v2307_v23 = vld [vmem:[#allocation2 + $0x45c] sm:$0xf0]  ;;  %v2214_v28 = vor.u32 %v2641_v19, %v2211_v20  ;;  %v2638_v31 = vld [vmem:[#allocation2 + $0x37c] sm:$0xf] }
  0x4c   :  { %1479 = vmatpush.bf16.msra.mxu0 %v1830_v48  ;;  %v2578_v48 = vld [vmem:[#allocation2 + $0x19c] sm:$0xf]  ;;  %v2499_v27 = vld [vmem:[#allocation2 + $0x5dc] sm:$0xf0]  ;;  %v2310_v29 = vor.u32 %v2665_v21, %v2307_v23  ;;  %v2199_v32 = vld [vmem:[#allocation2 + $0x384] sm:$0xf0] }
  0x4d   :  { %1493 = vmatpush.bf16.msra.mxu1 %v1926_v49  ;;  %v1959_v49 = vld [vmem:[#allocation2 + $0x1a4] sm:$0xf0]  ;;  %v2662_v33 = vld [vmem:[#allocation2 + $0x43c] sm:$0xf]  ;;  %v2202_v41 = vor.u32 %v2638_v31, %v2199_v32  ;;  %v2635_v46 = vld [vmem:[#allocation2 + $0x364] sm:$0xf] }
  0x4e   :  { %1507 = vmatpush.bf16.msra.mxu2 %v2022_v50  ;;  %v2602_v50 = vld [vmem:[#allocation2 + $0x25c] sm:$0xf]  ;;  %v1962_v56 = vor.u32 %v2578_v48, %v1959_v49  ;;  %v2295_v35 = vld [vmem:[#allocation2 + $0x444] sm:$0xf0]  ;;  %v2187_v48 = vld [vmem:[#allocation2 + $0x36c] sm:$0xf0] }
  0x4f   :  { %1521 = vmatpush.bf16.msra.mxu3 %v2118_v54  ;;  %v1755_v54 = vld [vmem:[#allocation2 + $0xc] sm:$0xf0]  ;;  %v2487_v40 = vld [vmem:[#allocation2 + $0x5c4] sm:$0xf0]  ;;  %v2298_v42 = vor.u32 %v2662_v33, %v2295_v35  ;;  %v2659_v49 = vld [vmem:[#allocation2 + $0x424] sm:$0xf] }
  0x50   :  { %1480 = vmatpush.bf16.msra.mxu0 %v1818_v61  ;;  %v2058_v61 = vor.u32 %v2602_v50, %v2055_v51  ;;  %v1758_v5 = vor.u32 %v2527_v53, %v1755_v54  ;;  %v2283_v51 = vld [vmem:[#allocation2 + $0x42c] sm:$0xf0]  ;;  %v2707_v54 = vld [vmem:[#allocation2 + $0x5a4] sm:$0xf]  ;;  %v2680_v2 = vld [vmem:[#allocation2 + $0x4cc] sm:$0xf] }
  0x51   :  { %1494 = vmatpush.bf16.msra.mxu1 %v1914_v62  ;;  %v1947_v62 = vld [vmem:[#allocation2 + $0x18c] sm:$0xf0]  ;;  %v2286_v57 = vor.u32 %v2659_v49, %v2283_v51  ;;  %v2367_v3 = vld [vmem:[#allocation2 + $0x4d4] sm:$0xf0]  ;;  %v2451_v19 = vld [vmem:[#allocation2 + $0x57c] sm:$0xf0] }
  0x52   :  { %1508 = vmatpush.bf16.msra.mxu2 %v2010_v63  ;;  %v2599_v63 = vld [vmem:[#allocation2 + $0x244] sm:$0xf]  ;;  %v2379_v53 = vld [vmem:[#allocation2 + $0x4ec] sm:$0xf0]  ;;  %v2626_v23 = vld [vmem:[#allocation2 + $0x31c] sm:$0xf] }
  0x53   :  { %1522 = vmatpush.bf16.msra.mxu3 %v2106_v4  ;;  %v2668_v4 = vld [vmem:[#allocation2 + $0x46c] sm:$0xf]  ;;  %v2046_v14 = vor.u32 %v2599_v63, %v2043_v0  ;;  %v2271_v0 = vld [vmem:[#allocation2 + $0x414] sm:$0xf0]  ;;  %v2439_v31 = vld [vmem:[#allocation2 + $0x564] sm:$0xf0] }
  0x54   :  { %1481 = vmatpush.bf16.msra.mxu0 %v1806_v11  ;;  %v1950_v11 = vor.u32 %v2575_v60, %v1947_v62  ;;  %v2322_v16 = vor.u32 %v2668_v4, %v2319_v6  ;;  %v2632_v60 = vld [vmem:[#allocation2 + $0x34c] sm:$0xf]  ;;  %v2623_v33 = vld [vmem:[#allocation2 + $0x304] sm:$0xf]  ;;  %v2550_v49 = vld [vmem:[#allocation2 + $0xb8] sm:$0xf0] }
  0x55   :  { %1495 = vmatpush.bf16.msra.mxu1 %v1902_v12  ;;  %v2716_v12 = vld [vmem:[#allocation2 + $0x5ec] sm:$0xf] }
  0x56   :  { %1509 = vmatpush.bf16.msra.mxu2 %v1998_v13  ;;  %v2511_v13 = vld [vmem:[#allocation2 + $0x5f4] sm:$0xf0]  ;;  %v2656_v62 = vld [vmem:[#allocation2 + $0x40c] sm:$0xf] }
  0x57   :  { %1523 = vmatpush.bf16.msra.mxu3 %v2094_v18  ;;  %v2418_v18 = vor.u32 %v2692_v7, %v2415_v8  ;;  %v2514_v22 = vor.u32 %v2716_v12, %v2511_v13  ;;  %v2704_v4 = vld [vmem:[#allocation2 + $0x58c] sm:$0xf]  ;;  %v2274_v7 = vor.u32 %v2656_v62, %v2271_v0  ;;  %v2370_v8 = vor.u32 %v2680_v2, %v2367_v3  ;;  %v2653_v12 = vld [vmem:[#allocation2 + $0x3f4] sm:$0xf]  ;;  %v1833_v0 = vld [vmem:[#allocation2 + $0x98] sm:$0xf] }
  0x58   :  { %1482 = vmatpush.bf16.msra.mxu0 %v1794_v24  ;;  %v2689_v24 = vld [vmem:[#allocation2 + $0x514] sm:$0xf]  ;;  %v2547_v2 = vld [vmem:[#allocation2 + $0xa0] sm:$0xf0]  ;;  %v1929_v3 = vld [vmem:[#allocation2 + $0x158] sm:$0xf] }
  0x59   :  { %1496 = vmatpush.bf16.msra.mxu1 %v1890_v25  ;;  %v2403_v25 = vld [vmem:[#allocation2 + $0x51c] sm:$0xf0] }
  0x5a   :  { %1510 = vmatpush.bf16.msra.mxu2 %v1986_v26  ;;  %v2713_v26 = vld [vmem:[#allocation2 + $0x5d4] sm:$0xf] }
  0x5b   :  { %1524 = vmatpush.bf16.msra.mxu3 %v2082_v30  ;;  %v2406_v30 = vor.u32 %v2689_v24, %v2403_v25  ;;  %v2502_v34 = vor.u32 %v2713_v26, %v2499_v27  ;;  %v2151_v24 = vld [vmem:[#allocation2 + $0x324] sm:$0xf0]  ;;  %v2650_v25 = vld [vmem:[#allocation2 + $0x3dc] sm:$0xf] }
  0x5c   :  { %1483 = vmatpush.bf16.msra.mxu0 %v1782_v36  ;;  %v2686_v36 = vld [vmem:[#allocation2 + $0x4fc] sm:$0xf]  ;;  %v2247_v27 = vld [vmem:[#allocation2 + $0x3e4] sm:$0xf0]  ;;  %v2154_v32 = vor.u32 %v2626_v23, %v2151_v24  ;;  %v2616_v23 = vld [vmem:[#allocation2 + $0x2c8] sm:$0xf0] }
  0x5d   :  { %1497 = vmatpush.bf16.msra.mxu1 %v1878_v37  ;;  %v2391_v37 = vld [vmem:[#allocation2 + $0x504] sm:$0xf0]  ;;  %v2250_v35 = vor.u32 %v2650_v25, %v2247_v27 }
  0x5e   :  { %1511 = vmatpush.bf16.msra.mxu2 %v1974_v38  ;;  %v2710_v38 = vld [vmem:[#allocation2 + $0x5bc] sm:$0xf]  ;;  %v1809_v27 = vld [vmem:[#allocation2 + $0x68] sm:$0xf] }
  0x5f   :  { %1525 = vmatpush.bf16.msra.mxu3 %v2070_v45  ;;  %v2394_v45 = vor.u32 %v2686_v36, %v2391_v37  ;;  %v2490_v50 = vor.u32 %v2710_v38, %v2487_v40  ;;  %v2647_v37 = vld [vmem:[#allocation2 + $0x3c4] sm:$0xf]  ;;  %v2235_v38 = vld [vmem:[#allocation2 + $0x3cc] sm:$0xf0] }
  0x60   :  { %1484 = vmatpush.bf16.msra.mxu0 %v1770_v52  ;;  %v2683_v52 = vld [vmem:[#allocation2 + $0x4e4] sm:$0xf] }
  0x61   :  { %1498 = vmatpush.bf16.msra.mxu1 %v1866_v55  ;;  %v2475_v55 = vld [vmem:[#allocation2 + $0x5ac] sm:$0xf0]  ;;  %v2382_v59 = vor.u32 %v2683_v52, %v2379_v53  ;;  %v2671_v40 = vld [vmem:[#allocation2 + $0x484] sm:$0xf]  ;;  %v2574_v52 = vld [vmem:[#allocation2 + $0x178] sm:$0xf0] }
  0x62   :  { %1512 = vmatpush.bf16.msra.mxu2 %v1962_v56  ;;  %v2190_v56 = vor.u32 %v2635_v46, %v2187_v48  ;;  %v2478_v63 = vor.u32 %v2707_v54, %v2475_v55  ;;  %v2427_v46 = vld [vmem:[#allocation2 + $0x54c] sm:$0xf0]  ;;  %v2598_v54 = vld [vmem:[#allocation2 + $0x238] sm:$0xf0]  ;;  %v2238_v55 = vor.u32 %v2647_v37, %v2235_v38 }
  0x63   :  { %1526 = vmatpush.bf16.msra.mxu3 %v2058_v61  ;;  %v2175_v61 = vld [vmem:[#allocation2 + $0x354] sm:$0xf0]  ;;  %v1845_v48 = vld [vmem:[#allocation2 + $0xb0] sm:$0xf] }
  0x64   :  { %1485 = vmatpush.bf16.msra.mxu0 %v1758_v5  ;;  %v2463_v5 = vld [vmem:[#allocation2 + $0x594] sm:$0xf0]  ;;  %v2178_v6 = vor.u32 %v2632_v60, %v2175_v61  ;;  %v2037_v53 = vld [vmem:[#allocation2 + $0x230] sm:$0xf]  ;;  %v1846_v61 = vor.u32 %v2550_v49, %v1845_v48  ;;  %v2586_v49 = vld [vmem:[#allocation2 + $0x1d8] sm:$0xf0] }
  0x65   :  { %1499 = vmatpush.bf16.msra.mxu1 %v1854_v9  ;;  %v2629_v9 = vld [vmem:[#allocation2 + $0x334] sm:$0xf]  ;;  %v2466_v13 = vor.u32 %v2704_v4, %v2463_v5  ;;  %v2571_v5 = vld [vmem:[#allocation2 + $0x160] sm:$0xf0]  ;;  %v1989_v48 = vld [vmem:[#allocation2 + $0x1d0] sm:$0xf] }
  0x66   :  { %1513 = vmatpush.bf16.msra.mxu2 %v1950_v11  ;;  %v2163_v11 = vld [vmem:[#allocation2 + $0x33c] sm:$0xf0] }
  0x67   :  { %1527 = vmatpush.bf16.msra.mxu3 %v2046_v14  ;;  %1486 = vmatmul.bf16.vlgmr.msra.gmra.mxu0 %v2783_v58  ;;  %v2259_v14 = vld [vmem:[#allocation2 + $0x3fc] sm:$0xf0]  ;;  %v2166_v20 = vor.u32 %v2629_v9, %v2163_v11  ;;  %v2619_v9 = vld [vmem:[#allocation2 + $0x2e0] sm:$0xf0]  ;;  %v1834_v11 = vor.u32 %v2547_v2, %v1833_v0 }
  0x68   :  { %1534 = vmatpush.bf16.msrb.mxu0 %v2226_v15  ;;  %1500 = vmatmul.bf16.vlgmr.msra.gmra.mxu1 %v2801_v10  ;;  %v2677_v15 = vld [vmem:[#allocation2 + $0x4b4] sm:$0xf]  ;;  %v2262_v21 = vor.u32 %v2653_v12, %v2259_v14  ;;  %v1930_v12 = vor.u32 %v2571_v5, %v1929_v3  ;;  %v1821_v14 = vld [vmem:[#allocation2 + $0x80] sm:$0xf]  ;;  %v2607_v0 = vld [vmem:[#allocation2 + $0x280] sm:$0xf0] }
  0x69   :  { %1548 = vmatpush.bf16.msrb.mxu1 %v2322_v16  ;;  %1514 = vmatmul.bf16.vlgmr.msra.gmra.mxu2 %v2788_v1  ;;  %v2355_v16 = vld [vmem:[#allocation2 + $0x4bc] sm:$0xf0] }
  0x6a   :  { %1562 = vmatpush.bf16.msrb.mxu2 %v2418_v18  ;;  %1528 = vmatmul.bf16.vlgmr.msra.gmra.mxu3 %v2806_v17  ;;  %v2701_v18 = vld [vmem:[#allocation2 + $0x574] sm:$0xf]  ;;  %v1773_v5 = vld [vmem:[#allocation2 + $0x20] sm:$0xf] }
  0x6b   :  { %1576 = vmatpush.bf16.msrb.mxu3 %v2514_v22  ;;  %v2358_v22 = vor.u32 %v2677_v15, %v2355_v16  ;;  %v2454_v26 = vor.u32 %v2701_v18, %v2451_v19  ;;  %v2544_v15 = vld [vmem:[#allocation2 + $0x88] sm:$0xf0]  ;;  %v1917_v16 = vld [vmem:[#allocation2 + $0x140] sm:$0xf] }
  0x6c   :  { %1535 = vmatpush.bf16.msrb.mxu0 %v2214_v28  ;;  %v2674_v28 = vld [vmem:[#allocation2 + $0x49c] sm:$0xf]  ;;  %v2568_v19 = vld [vmem:[#allocation2 + $0x148] sm:$0xf0]  ;;  %v1822_v24 = vor.u32 %v2544_v15, %v1821_v14 }
  0x6d   :  { %1549 = vmatpush.bf16.msrb.mxu1 %v2310_v29  ;;  %v2343_v29 = vld [vmem:[#allocation2 + $0x4a4] sm:$0xf0]  ;;  %v1918_v25 = vor.u32 %v2568_v19, %v1917_v16  ;;  %v2604_v14 = vld [vmem:[#allocation2 + $0x268] sm:$0xf0] }
  0x6e   :  { %1563 = vmatpush.bf16.msrb.mxu2 %v2406_v30  ;;  %v2698_v30 = vld [vmem:[#allocation2 + $0x55c] sm:$0xf]  ;;  %v2346_v36 = vor.u32 %v2674_v28, %v2343_v29  ;;  %v2541_v28 = vld [vmem:[#allocation2 + $0x70] sm:$0xf0]  ;;  %v1905_v29 = vld [vmem:[#allocation2 + $0x128] sm:$0xf] }
  0x6f   :  { %1577 = vmatpush.bf16.msrb.mxu3 %v2502_v34  ;;  %v2139_v34 = vld [vmem:[#allocation2 + $0x30c] sm:$0xf0]  ;;  %v1761_v16 = vld [vmem:[#allocation2 + $0x8] sm:$0xf] }
  0x70   :  { %1536 = vmatpush.bf16.msrb.mxu0 %v2202_v41  ;;  %v2442_v41 = vor.u32 %v2698_v30, %v2439_v31  ;;  %v2142_v51 = vor.u32 %v2623_v33, %v2139_v34  ;;  %v2565_v31 = vld [vmem:[#allocation2 + $0x130] sm:$0xf0]  ;;  %v2097_v34 = vld [vmem:[#allocation2 + $0x2a8] sm:$0xf] }
  0x71   :  { %1550 = vmatpush.bf16.msrb.mxu1 %v2298_v42  ;;  %v2331_v42 = vld [vmem:[#allocation2 + $0x48c] sm:$0xf0]  ;;  %v2589_v33 = vld [vmem:[#allocation2 + $0x1f0] sm:$0xf0]  ;;  %v1906_v37 = vor.u32 %v2565_v31, %v1905_v29  ;;  %v2646_v29 = vld [vmem:[#allocation2 + $0x3b8] sm:$0xf0] }
  0x72   :  { %1564 = vmatpush.bf16.msrb.mxu2 %v2394_v45  ;;  %v2695_v45 = vld [vmem:[#allocation2 + $0x544] sm:$0xf] }
  0x73   :  { %1578 = vmatpush.bf16.msrb.mxu3 %v2490_v50  ;;  %v1941_v50 = vld [vmem:[#allocation2 + $0x170] sm:$0xf]  ;;  %v2430_v60 = vor.u32 %v2695_v45, %v2427_v46  ;;  %v2562_v46 = vld [vmem:[#allocation2 + $0x118] sm:$0xf0] }
  0x74   :  { %1537 = vmatpush.bf16.msrb.mxu0 %v2190_v56  ;;  %v2334_v56 = vor.u32 %v2671_v40, %v2331_v42  ;;  %v1942_v62 = vor.u32 %v2574_v52, %v1941_v50  ;;  %v1797_v40 = vld [vmem:[#allocation2 + $0x50] sm:$0xf] }
  0x75   :  { %1551 = vmatpush.bf16.msrb.mxu1 %v2286_v57  ;;  %v2133_v57 = vld [vmem:[#allocation2 + $0x2f0] sm:$0xf] }
  0x76   :  { %1565 = vmatpush.bf16.msrb.mxu2 %v2382_v59  ;;  %v2622_v59 = vld [vmem:[#allocation2 + $0x2f8] sm:$0xf0]  ;;  %v1893_v42 = vld [vmem:[#allocation2 + $0x110] sm:$0xf] }
  0x77   :  { %1579 = vmatpush.bf16.msrb.mxu3 %v2478_v63  ;;  %v2038_v63 = vor.u32 %v2598_v54, %v2037_v53  ;;  %v2134_v4 = vor.u32 %v2622_v59, %v2133_v57  ;;  %v2085_v50 = vld [vmem:[#allocation2 + $0x290] sm:$0xf]  ;;  %v1894_v53 = vor.u32 %v2562_v46, %v1893_v42  ;;  %v1990_v54 = vor.u32 %v2586_v49, %v1989_v48  ;;  %v1881_v57 = vld [vmem:[#allocation2 + $0xf8] sm:$0xf]  ;;  %v2643_v48 = vld [vmem:[#allocation2 + $0x3a0] sm:$0xf0] }
  0x78   :  { %1538 = vmatpush.bf16.msrb.mxu0 %v2178_v6  ;;  %v2025_v6 = vld [vmem:[#allocation2 + $0x218] sm:$0xf] }
  0x79   :  { %1552 = vmatpush.bf16.msrb.mxu1 %v2274_v7  ;;  %v2595_v7 = vld [vmem:[#allocation2 + $0x220] sm:$0xf0]  ;;  %v2217_v46 = vld [vmem:[#allocation2 + $0x398] sm:$0xf] }
  0x7a   :  { %1566 = vmatpush.bf16.msrb.mxu2 %v2370_v8  ;;  %v2121_v8 = vld [vmem:[#allocation2 + $0x2d8] sm:$0xf] }
  0x7b   :  { %1580 = vmatpush.bf16.msrb.mxu3 %v2466_v13  ;;  %v2026_v13 = vor.u32 %v2595_v7, %v2025_v6  ;;  %v2122_v18 = vor.u32 %v2619_v9, %v2121_v8  ;;  %v2532_v6 = vld [vmem:[#allocation2 + $0x28] sm:$0xf0]  ;;  %v1869_v7 = vld [vmem:[#allocation2 + $0xe0] sm:$0xf]  ;;  %v2313_v49 = vld [vmem:[#allocation2 + $0x458] sm:$0xf] }
  0x7c   :  { %1539 = vmatpush.bf16.msrb.mxu0 %v2166_v20  ;;  %v2013_v20 = vld [vmem:[#allocation2 + $0x200] sm:$0xf]  ;;  %v2556_v9 = vld [vmem:[#allocation2 + $0xe8] sm:$0xf0]  ;;  %v1774_v15 = vor.u32 %v2532_v6, %v1773_v5 }
  0x7d   :  { %1553 = vmatpush.bf16.msrb.mxu1 %v2262_v21  ;;  %v2592_v21 = vld [vmem:[#allocation2 + $0x208] sm:$0xf0]  ;;  %v1870_v19 = vor.u32 %v2556_v9, %v1869_v7  ;;  %v2193_v9 = vld [vmem:[#allocation2 + $0x368] sm:$0xf] }
  0x7e   :  { %1567 = vmatpush.bf16.msrb.mxu2 %v2358_v22  ;;  %v2109_v22 = vld [vmem:[#allocation2 + $0x2c0] sm:$0xf]  ;;  %v2712_v5 = vld [vmem:[#allocation2 + $0x5c8] sm:$0xf0] }
  0x7f   :  { %1581 = vmatpush.bf16.msrb.mxu3 %v2454_v26  ;;  %v2014_v26 = vor.u32 %v2592_v21, %v2013_v20  ;;  %v2110_v30 = vor.u32 %v2616_v23, %v2109_v22  ;;  %v1857_v21 = vld [vmem:[#allocation2 + $0xc8] sm:$0xf]  ;;  %v2553_v22 = vld [vmem:[#allocation2 + $0xd0] sm:$0xf0] }
  0x80   :  { %1540 = vmatpush.bf16.msrb.mxu0 %v2154_v32  ;;  %v2001_v32 = vld [vmem:[#allocation2 + $0x1e8] sm:$0xf] }
  0x81   :  { %1554 = vmatpush.bf16.msrb.mxu1 %v2250_v35  ;;  %v2613_v35 = vld [vmem:[#allocation2 + $0x2b0] sm:$0xf0]  ;;  %v2002_v38 = vor.u32 %v2589_v33, %v2001_v32  ;;  %v1953_v23 = vld [vmem:[#allocation2 + $0x188] sm:$0xf]  ;;  %v2670_v32 = vld [vmem:[#allocation2 + $0x478] sm:$0xf0] }
  0x82   :  { %1568 = vmatpush.bf16.msrb.mxu2 %v2346_v36  ;;  %v1810_v36 = vor.u32 %v2541_v28, %v1809_v27  ;;  %v2098_v45 = vor.u32 %v2613_v35, %v2097_v34  ;;  %v2601_v27 = vld [vmem:[#allocation2 + $0x250] sm:$0xf0]  ;;  %v2229_v28 = vld [vmem:[#allocation2 + $0x3b0] sm:$0xf]  ;;  %v2694_v34 = vld [vmem:[#allocation2 + $0x538] sm:$0xf0]  ;;  %v1858_v35 = vor.u32 %v2553_v22, %v1857_v21 }
  0x83   :  { %1582 = vmatpush.bf16.msrb.mxu3 %v2442_v41  ;;  %v2538_v41 = vld [vmem:[#allocation2 + $0x58] sm:$0xf0]  ;;  %v2421_v33 = vld [vmem:[#allocation2 + $0x530] sm:$0xf] }
  0x84   :  { %1541 = vmatpush.bf16.msrb.mxu0 %v2142_v51  ;;  %v2610_v51 = vld [vmem:[#allocation2 + $0x298] sm:$0xf0]  ;;  %v1798_v52 = vor.u32 %v2538_v41, %v1797_v40  ;;  %v2230_v41 = vor.u32 %v2646_v29, %v2229_v28  ;;  %v2277_v21 = vld [vmem:[#allocation2 + $0x410] sm:$0xf]  ;;  %v2169_v29 = vld [vmem:[#allocation2 + $0x338] sm:$0xf] }
  0x85   :  { %1555 = vmatpush.bf16.msrb.mxu1 %v2238_v55  ;;  %v1785_v55 = vld [vmem:[#allocation2 + $0x38] sm:$0xf]  ;;  %v2086_v59 = vor.u32 %v2610_v51, %v2085_v50  ;;  %v2667_v51 = vld [vmem:[#allocation2 + $0x460] sm:$0xf0] }
  0x86   :  { %1569 = vmatpush.bf16.msrb.mxu2 %v2334_v56  ;;  %v2535_v56 = vld [vmem:[#allocation2 + $0x40] sm:$0xf0] }
  0x87   :  { %1583 = vmatpush.bf16.msrb.mxu3 %v2430_v60  ;;  %1542 = vmatmul.bf16.vlgmr.msrb.gmra.mxu0 %v2834_v39  ;;  %v2559_v60 = vld [vmem:[#allocation2 + $0x100] sm:$0xf0]  ;;  %v1786_v2 = vor.u32 %v2535_v56, %v1785_v55  ;;  %v2218_v56 = vor.u32 %v2643_v48, %v2217_v46 }
  0x88   :  { %1590 = vmatpush.bf16.msra.mxu0 %v1846_v61  ;;  %1556 = vmatmul.bf16.vlgmr.msrb.gmra.mxu1 %v2838_v44  ;;  %v1977_v61 = vld [vmem:[#allocation2 + $0x1b8] sm:$0xf]  ;;  %v1882_v3 = vor.u32 %v2559_v60, %v1881_v57  ;;  %v2715_v55 = vld [vmem:[#allocation2 + $0x5e0] sm:$0xf0]  ;;  %v2314_v57 = vor.u32 %v2667_v51, %v2313_v49  ;;  %v2205_v60 = vld [vmem:[#allocation2 + $0x380] sm:$0xf] }
  0x89   :  { %1604 = vmatpush.bf16.msra.mxu1 %v1942_v62  ;;  %1570 = vmatmul.bf16.vlgmr.msrb.gmra.mxu2 %v2836_v43  ;;  %v2583_v62 = vld [vmem:[#allocation2 + $0x1c0] sm:$0xf0]  ;;  %v2628_v51 = vld [vmem:[#allocation2 + $0x328] sm:$0xf0] }
  0x8a   :  { %1618 = vmatpush.bf16.msra.mxu2 %v2038_v63  ;;  %1584 = vmatmul.bf16.vlgmr.msrb.gmra.mxu3 %v2840_v47  ;;  %v2073_v63 = vld [vmem:[#allocation2 + $0x278] sm:$0xf] }
  0x8b   :  { %1632 = vmatpush.bf16.msra.mxu3 %v2134_v4  ;;  %v1978_v4 = vor.u32 %v2583_v62, %v1977_v61  ;;  %v2074_v8 = vor.u32 %v2607_v0, %v2073_v63  ;;  %v2640_v61 = vld [vmem:[#allocation2 + $0x388] sm:$0xf0]  ;;  %v2301_v62 = vld [vmem:[#allocation2 + $0x440] sm:$0xf] }
  0x8c   :  { %1591 = vmatpush.bf16.msra.mxu0 %v1834_v11  ;;  %v1965_v11 = vld [vmem:[#allocation2 + $0x1a0] sm:$0xf]  ;;  %v2664_v0 = vld [vmem:[#allocation2 + $0x448] sm:$0xf0]  ;;  %v2206_v6 = vor.u32 %v2640_v61, %v2205_v60 }
  0x8d   :  { %1605 = vmatpush.bf16.msra.mxu1 %v1930_v12  ;;  %v2580_v12 = vld [vmem:[#allocation2 + $0x1a8] sm:$0xf0]  ;;  %v2302_v7 = vor.u32 %v2664_v0, %v2301_v62  ;;  %v2145_v0 = vld [vmem:[#allocation2 + $0x308] sm:$0xf] }
  0x8e   :  { %1619 = vmatpush.bf16.msra.mxu2 %v2026_v13  ;;  %v2061_v13 = vld [vmem:[#allocation2 + $0x260] sm:$0xf]  ;;  %v1966_v20 = vor.u32 %v2580_v12, %v1965_v11  ;;  %v2637_v11 = vld [vmem:[#allocation2 + $0x370] sm:$0xf0]  ;;  %v2700_v60 = vld [vmem:[#allocation2 + $0x568] sm:$0xf0] }
  0x8f   :  { %1633 = vmatpush.bf16.msra.mxu3 %v2122_v18  ;;  %v2529_v18 = vld [vmem:[#allocation2 + $0x10] sm:$0xf0] }
  0x90   :  { %1592 = vmatpush.bf16.msra.mxu0 %v1822_v24  ;;  %v2062_v24 = vor.u32 %v2604_v14, %v2061_v13  ;;  %v1762_v31 = vor.u32 %v2529_v18, %v1761_v16  ;;  %v2661_v13 = vld [vmem:[#allocation2 + $0x430] sm:$0xf0]  ;;  %v2385_v14 = vld [vmem:[#allocation2 + $0x4e8] sm:$0xf] }
  0x91   :  { %1606 = vmatpush.bf16.msra.mxu1 %v1918_v25  ;;  %v2577_v25 = vld [vmem:[#allocation2 + $0x190] sm:$0xf0]  ;;  %v2481_v16 = vld [vmem:[#allocation2 + $0x5a8] sm:$0xf] }
  0x92   :  { %1620 = vmatpush.bf16.msra.mxu2 %v2014_v26  ;;  %v2049_v26 = vld [vmem:[#allocation2 + $0x248] sm:$0xf] }
  0x93   :  { %1634 = vmatpush.bf16.msra.mxu3 %v2110_v30  ;;  %v2325_v30 = vld [vmem:[#allocation2 + $0x470] sm:$0xf]  ;;  %v2050_v40 = vor.u32 %v2601_v27, %v2049_v26  ;;  %v2706_v27 = vld [vmem:[#allocation2 + $0x598] sm:$0xf0] }
  0x94   :  { %1593 = vmatpush.bf16.msra.mxu0 %v1810_v36  ;;  %v1954_v36 = vor.u32 %v2577_v25, %v1953_v23  ;;  %v2326_v42 = vor.u32 %v2670_v32, %v2325_v30  ;;  %v2658_v23 = vld [vmem:[#allocation2 + $0x418] sm:$0xf0]  ;;  %v2469_v26 = vld [vmem:[#allocation2 + $0x590] sm:$0xf]  ;;  %v2631_v32 = vld [vmem:[#allocation2 + $0x340] sm:$0xf0] }
  0x95   :  { %1607 = vmatpush.bf16.msra.mxu1 %v1906_v37  ;;  %v2517_v37 = vld [vmem:[#allocation2 + $0x5f0] sm:$0xf]  ;;  %v2682_v25 = vld [vmem:[#allocation2 + $0x4d8] sm:$0xf0]  ;;  %v2278_v30 = vor.u32 %v2658_v23, %v2277_v21 }
  0x96   :  { %1621 = vmatpush.bf16.msra.mxu2 %v2002_v38  ;;  %v2718_v38 = vld [vmem:[#allocation2 + $0x5f8] sm:$0xf0] }
  0x97   :  { %1635 = vmatpush.bf16.msra.mxu3 %v2098_v45  ;;  %v2422_v45 = vor.u32 %v2694_v34, %v2421_v33  ;;  %v2518_v50 = vor.u32 %v2718_v38, %v2517_v37  ;;  %v2265_v33 = vld [vmem:[#allocation2 + $0x3f8] sm:$0xf]  ;;  %v2655_v34 = vld [vmem:[#allocation2 + $0x400] sm:$0xf0]  ;;  %v2861_v38 = vld [vmem:[%s2890_s2] sm:$0x7] }
  0x98   :  { %1594 = vmatpush.bf16.msra.mxu0 %v1798_v52  ;;  %v2409_v52 = vld [vmem:[#allocation2 + $0x518] sm:$0xf]  ;;  %v2679_v37 = vld [vmem:[#allocation2 + $0x4c0] sm:$0xf0]  ;;  %v2266_v46 = vor.u32 %v2655_v34, %v2265_v33  ;;  %v296_v49 = vperm.slane %v2861_v38, 0 }
  0x99   :  { %1608 = vmatpush.bf16.msra.mxu1 %v1894_v53  ;;  %v2691_v53 = vld [vmem:[#allocation2 + $0x520] sm:$0xf0] }
  0x9a   :  { %1622 = vmatpush.bf16.msra.mxu2 %v1990_v54  ;;  %v2505_v54 = vld [vmem:[#allocation2 + $0x5d8] sm:$0xf] }
  0x9b   :  { %1636 = vmatpush.bf16.msra.mxu3 %v2086_v59  ;;  %v2410_v59 = vor.u32 %v2691_v53, %v2409_v52  ;;  %v2506_v63 = vor.u32 %v2715_v55, %v2505_v54  ;;  %v2253_v52 = vld [vmem:[#allocation2 + $0x3e0] sm:$0xf]  ;;  %v2652_v54 = vld [vmem:[#allocation2 + $0x3e8] sm:$0xf0] }
  0x9c   :  { %1595 = vmatpush.bf16.msra.mxu0 %v1786_v2  ;;  %v2397_v2 = vld [vmem:[#allocation2 + $0x500] sm:$0xf]  ;;  %v2254_v62 = vor.u32 %v2652_v54, %v2253_v52 }
  0x9d   :  { %1609 = vmatpush.bf16.msra.mxu1 %v1882_v3  ;;  %v2688_v3 = vld [vmem:[#allocation2 + $0x508] sm:$0xf0]  ;;  %v2349_v55 = vld [vmem:[#allocation2 + $0x4a0] sm:$0xf] }
  0x9e   :  { %1623 = vmatpush.bf16.msra.mxu2 %v1978_v4  ;;  %v2493_v4 = vld [vmem:[#allocation2 + $0x5c0] sm:$0xf] }
  0x9f   :  { %1637 = vmatpush.bf16.msra.mxu3 %v2074_v8  ;;  %v2398_v8 = vor.u32 %v2688_v3, %v2397_v2  ;;  %v2494_v12 = vor.u32 %v2712_v5, %v2493_v4  ;;  %v2625_v2 = vld [vmem:[#allocation2 + $0x310] sm:$0xf0]  ;;  %v2241_v3 = vld [vmem:[#allocation2 + $0x3c8] sm:$0xf] }
  0xa0   :  { %1596 = vmatpush.bf16.msra.mxu0 %v1774_v15  ;;  %v2685_v15 = vld [vmem:[#allocation2 + $0x4f0] sm:$0xf0] }
  0xa1   :  { %1610 = vmatpush.bf16.msra.mxu1 %v1870_v19  ;;  %v2181_v19 = vld [vmem:[#allocation2 + $0x350] sm:$0xf] }
  0xa2   :  { %1624 = vmatpush.bf16.msra.mxu2 %v1966_v20  ;;  %v2634_v20 = vld [vmem:[#allocation2 + $0x358] sm:$0xf0] }
  0xa3   :  { %1638 = vmatpush.bf16.msra.mxu3 %v2062_v24  ;;  %v2373_v24 = vld [vmem:[#allocation2 + $0x4d0] sm:$0xf]  ;;  %v2182_v28 = vor.u32 %v2634_v20, %v2181_v19 }
  0xa4   :  { %1597 = vmatpush.bf16.msra.mxu0 %v1762_v31  ;;  %v2374_v31 = vor.u32 %v2682_v25, %v2373_v24 }
  0xa5   :  { %1611 = vmatpush.bf16.msra.mxu1 %v1858_v35  ;;  %v2470_v35 = vor.u32 %v2706_v27, %v2469_v26 }
  0xa6   :  { %1625 = vmatpush.bf16.msra.mxu2 %v1954_v36  ;;  %v2361_v36 = vld [vmem:[#allocation2 + $0x4b8] sm:$0xf] }
  0xa7   :  { %1639 = vmatpush.bf16.msra.mxu3 %v2050_v40  ;;  %1598 = vmatmul.bf16.vlgmr.msra.gmra.mxu0 %v2783_v58  ;;  %v2709_v58 = vld [vmem:[#allocation2 + $0x5b0] sm:$0xf0]  ;;  %v2457_v40 = vld [vmem:[#allocation2 + $0x578] sm:$0xf]  ;;  %v2362_v48 = vor.u32 %v2679_v37, %v2361_v36 }
  0xa8   :  { %1646 = vmatpush.bf16.msrb.mxu0 %v2230_v41  ;;  %1612 = vmatmul.bf16.vlgmr.msra.gmra.mxu1 %v2801_v10  ;;  %v2386_v10 = vor.u32 %v2685_v15, %v2385_v14  ;;  %v2482_v22 = vor.u32 %v2709_v58, %v2481_v16  ;;  %v2703_v41 = vld [vmem:[#allocation2 + $0x580] sm:$0xf0] }
  0xa9   :  { %1660 = vmatpush.bf16.msrb.mxu1 %v2326_v42  ;;  %1626 = vmatmul.bf16.vlgmr.msra.gmra.mxu2 %v2788_v1  ;;  %v2289_v1 = vld [vmem:[#allocation2 + $0x428] sm:$0xf]  ;;  %v2170_v42 = vor.u32 %v2631_v32, %v2169_v29  ;;  %v2458_v53 = vor.u32 %v2703_v41, %v2457_v40 }
  0xaa   :  { %1674 = vmatpush.bf16.msrb.mxu2 %v2422_v45  ;;  %1640 = vmatmul.bf16.vlgmr.msra.gmra.mxu3 %v2806_v17  ;;  %v2194_v17 = vor.u32 %v2637_v11, %v2193_v9  ;;  %v2290_v18 = vor.u32 %v2661_v13, %v2289_v1  ;;  %v2157_v45 = vld [vmem:[#allocation2 + $0x320] sm:$0xf]  ;;  %v2433_v9 = vld [vmem:[#allocation2 + $0x548] sm:$0xf]  ;;  %v2697_v11 = vld [vmem:[#allocation2 + $0x550] sm:$0xf0]  ;;  %v2146_v1 = vor.u32 %v2625_v2, %v2145_v0 }
  0xab   :  { %1688 = vmatpush.bf16.msrb.mxu3 %v2518_v50  ;;  %v1375_v50 = vpop.f32.mrf.mxu0  ;;  %v2158_v61 = vor.u32 %v2628_v51, %v2157_v45  ;;  %v2434_v58 = vor.u32 %v2697_v11, %v2433_v9  ;;  %v297_v45 = vperm.slane %v2861_v38, 1 }
  0xac   :  { %1647 = vmatpush.bf16.msrb.mxu0 %v2218_v56  ;;  %v2676_v56 = vld [vmem:[#allocation2 + $0x4a8] sm:$0xf0]  ;;  %v1376_v4 = vadd.f32 %v1375_v50, %v296_v49 }
  0xad   :  { %1661 = vmatpush.bf16.msrb.mxu1 %v2314_v57  ;;  %v1389_v57 = vpop.f32.mrf.mxu1 }
  0xae   :  { %1675 = vmatpush.bf16.msrb.mxu2 %v2410_v59  ;;  %v2445_v59 = vld [vmem:[#allocation2 + $0x560] sm:$0xf]  ;;  %v1390_v16 = vadd.f32 %v1389_v57, %v1376_v4 }
  0xaf   :  { %1689 = vmatpush.bf16.msrb.mxu3 %v2506_v63  ;;  %v2350_v63 = vor.u32 %v2676_v56, %v2349_v55  ;;  %v2446_v5 = vor.u32 %v2700_v60, %v2445_v59  ;;  %v1417_v15 = vpop.f32.mrf.mxu3 }
  0xb0   :  { %1648 = vmatpush.bf16.msrb.mxu0 %v2206_v6  ;;  %v2649_v6 = vld [vmem:[#allocation2 + $0x3d0] sm:$0xf0] }
  0xb1   :  { %1662 = vmatpush.bf16.msrb.mxu1 %v2302_v7  ;;  %v2337_v7 = vld [vmem:[#allocation2 + $0x488] sm:$0xf]  ;;  %v2242_v13 = vor.u32 %v2649_v6, %v2241_v3 }
  0xb2   :  { %1676 = vmatpush.bf16.msrb.mxu2 %v2398_v8  ;;  %v2673_v8 = vld [vmem:[#allocation2 + $0x490] sm:$0xf0] }
  0xb3   :  { %1690 = vmatpush.bf16.msrb.mxu3 %v2494_v12  ;;  %v1403_v12 = vpop.f32.mrf.mxu2  ;;  %v2338_v14 = vor.u32 %v2673_v8, %v2337_v7 }
  0xb4   :  { %1649 = vmatpush.bf16.msrb.mxu0 %v2194_v17  ;;  %v1377_v17 = vpop.f32.mrf.mxu0 }
  0xb5   :  { %1663 = vmatpush.bf16.msrb.mxu1 %v2290_v18  ;;  %v1391_v18 = vpop.f32.mrf.mxu1  ;;  %v1378_v19 = vadd.f32 %v1377_v17, %v296_v49 }
  0xb6   :  { %1677 = vmatpush.bf16.msrb.mxu2 %v2386_v10  ;;  %v1404_v10 = vadd.f32 %v1403_v12, %v1390_v16 }
  0xb7   :  { %1691 = vmatpush.bf16.msrb.mxu3 %v2482_v22  ;;  %v1392_v22 = vadd.f32 %v1391_v18, %v1378_v19  ;;  %v1419_v23 = vpop.f32.mrf.mxu3  ;;  %v298_v18 = vperm.slane %v2861_v38, 2 }
  0xb8   :  { %1650 = vmatpush.bf16.msrb.mxu0 %v2182_v28  ;;  %v1418_v20 = vadd.f32 %v1417_v15, %v1404_v10 }
  0xb9   :  { %1664 = vmatpush.bf16.msrb.mxu1 %v2278_v30 }
  0xba   :  { %1678 = vmatpush.bf16.msrb.mxu2 %v2374_v31 }
  0xbb   :  { %1692 = vmatpush.bf16.msrb.mxu3 %v2470_v35  ;;  %v1405_v21 = vpop.f32.mrf.mxu2 }
  0xbc   :  { %1651 = vmatpush.bf16.msrb.mxu0 %v2170_v42  ;;  %v1406_v27 = vadd.f32 %v1405_v21, %v1392_v22 }
  0xbd   :  { %1665 = vmatpush.bf16.msrb.mxu1 %v2266_v46 }
  0xbe   :  { %1679 = vmatpush.bf16.msrb.mxu2 %v2362_v48  ;;  %v1420_v29 = vadd.f32 %v1419_v23, %v1406_v27 }
  0xbf   :  { %1693 = vmatpush.bf16.msrb.mxu3 %v2458_v53 }
  0xc0   :  { %1652 = vmatpush.bf16.msrb.mxu0 %v2158_v61 }
  0xc1   :  { %1666 = vmatpush.bf16.msrb.mxu1 %v2254_v62 }
  0xc2   :  { %1680 = vmatpush.bf16.msrb.mxu2 %v2350_v63 }
  0xc3   :  { %1694 = vmatpush.bf16.msrb.mxu3 %v2446_v5 }
  0xc4   :  { %1653 = vmatpush.bf16.msrb.mxu0 %v2146_v1  ;;  %v1431_v24 = vpop.f32.mrf.mxu0 }
  0xc5   :  { %1667 = vmatpush.bf16.msrb.mxu1 %v2242_v13  ;;  %v1432_v25 = vadd.f32 %v1431_v24, %v1418_v20  ;;  %v1445_v26 = vpop.f32.mrf.mxu1 }
  0xc6   :  { %1681 = vmatpush.bf16.msrb.mxu2 %v2338_v14 }
  0xc7   :  { %1695 = vmatpush.bf16.msrb.mxu3 %v2434_v58  ;;  %1654 = vmatmul.bf16.vlgmr.msrb.gmra.mxu0 %v2834_v39  ;;  %v1446_v28 = vadd.f32 %v1445_v26, %v1432_v25 }
  0xc8   :  { %1668 = vmatmul.bf16.vlgmr.msrb.gmra.mxu1 %v2838_v44 }
  0xc9   :  { %1682 = vmatmul.bf16.vlgmr.msrb.gmra.mxu2 %v2836_v43 }
  0xca   :  { %1696 = vmatmul.bf16.vlgmr.msrb.gmra.mxu3 %v2840_v47 }
  0xcc   :  { %v1459_v30 = vpop.f32.mrf.mxu2  ;;  %v1433_v39 = vpop.f32.mrf.mxu0 }
  0xcd   :  { %v1460_v31 = vadd.f32 %v1459_v30, %v1446_v28  ;;  %v1473_v32 = vpop.f32.mrf.mxu3  ;;  %v1434_v33 = vadd.f32 %v1433_v39, %v1420_v29  ;;  %v1447_v34 = vpop.f32.mrf.mxu1 }
  0xcf   :  { %v1474_v44 = vadd.f32 %v1473_v32, %v1460_v31  ;;  %v1448_v47 = vadd.f32 %v1447_v34, %v1434_v33 }
  0xd1   :  { %v1702_v43 = vmax.f32 %v1474_v44, 0.0 }
  0xd3   :  { %1708 = vst [vmem:[%s2891_s3] sm:$0xff] %v1702_v43 }
  0xd4   :  { %v1461_v35 = vpop.f32.mrf.mxu2 }
  0xd5   :  { %v1462_v36 = vadd.f32 %v1461_v35, %v1448_v47  ;;  %v1475_v37 = vpop.f32.mrf.mxu3 }
  0xd7   :  { %v1476_v40 = vadd.f32 %v1475_v37, %v1462_v36 }
  0xd9   :  { %v1705_v41 = vmax.f32 %v1476_v40, 0.0 }
  0xdb   :  { %1711 = vst [vmem:[%s2891_s3 + $0x18] sm:$0xff] %v1705_v41 }
  0xe4   :  { %v1487_v42 = vpop.f32.mrf.mxu0 }
  0xe5   :  { %v1501_v46 = vpop.f32.mrf.mxu1  ;;  %v1488_v48 = vadd.f32 %v1487_v42, %v297_v45 }
  0xe7   :  { %v1502_v51 = vadd.f32 %v1501_v46, %v1488_v48 }
  0xec   :  { %v1515_v49 = vpop.f32.mrf.mxu2  ;;  %v1489_v52 = vpop.f32.mrf.mxu0 }
  0xed   :  { %v1529_v50 = vpop.f32.mrf.mxu3  ;;  %v1503_v53 = vpop.f32.mrf.mxu1  ;;  %v1516_v54 = vadd.f32 %v1515_v49, %v1502_v51  ;;  %v1490_v55 = vadd.f32 %v1489_v52, %v297_v45 }
  0xef   :  { %v1530_v56 = vadd.f32 %v1529_v50, %v1516_v54  ;;  %v1504_v59 = vadd.f32 %v1503_v53, %v1490_v55 }
  0xf4   :  { %v1517_v57 = vpop.f32.mrf.mxu2 }
  0xf5   :  { %v1531_v60 = vpop.f32.mrf.mxu3  ;;  %v1518_v0 = vadd.f32 %v1517_v57, %v1504_v59 }
  0xf7   :  { %v1532_v3 = vadd.f32 %v1531_v60, %v1518_v0 }
 0x104   :  { %v1543_v61 = vpop.f32.mrf.mxu0 }
 0x105   :  { %v1544_v62 = vadd.f32 %v1543_v61, %v1530_v56  ;;  %v1557_v63 = vpop.f32.mrf.mxu1 }
 0x107   :  { %v1558_v2 = vadd.f32 %v1557_v63, %v1544_v62 }
 0x10c   :  { %v1571_v4 = vpop.f32.mrf.mxu2  ;;  %v1545_v6 = vpop.f32.mrf.mxu0 }
 0x10d   :  { %v1572_v5 = vadd.f32 %v1571_v4, %v1558_v2  ;;  %v1585_v7 = vpop.f32.mrf.mxu3  ;;  %v1546_v8 = vadd.f32 %v1545_v6, %v1532_v3  ;;  %v1559_v11 = vpop.f32.mrf.mxu1 }
 0x10f   :  { %v1586_v9 = vadd.f32 %v1585_v7, %v1572_v5  ;;  %v1560_v12 = vadd.f32 %v1559_v11, %v1546_v8 }
 0x111   :  { %v1703_v1 = vmax.f32 %v1586_v9, 0.0 }
 0x113   :  { %1709 = vst [vmem:[%s2891_s3 + $0x8] sm:$0xff] %v1703_v1 }
 0x114   :  { %v1573_v13 = vpop.f32.mrf.mxu2 }
 0x115   :  { %v1574_v14 = vadd.f32 %v1573_v13, %v1560_v12  ;;  %v1587_v15 = vpop.f32.mrf.mxu3 }
 0x117   :  { %v1588_v16 = vadd.f32 %v1587_v15, %v1574_v14 }
 0x119   :  { %v1706_v58 = vmax.f32 %v1588_v16, 0.0 }
 0x11b   :  { %1712 = vst [vmem:[%s2891_s3 + $0x20] sm:$0xff] %v1706_v58 }
 0x124   :  { %v1599_v17 = vpop.f32.mrf.mxu0 }
 0x125   :  { %v1613_v10 = vpop.f32.mrf.mxu1  ;;  %v1600_v19 = vadd.f32 %v1599_v17, %v298_v18 }
 0x127   :  { %v1614_v22 = vadd.f32 %v1613_v10, %v1600_v19 }
 0x12c   :  { %v1627_v20 = vpop.f32.mrf.mxu2  ;;  %v1601_v23 = vpop.f32.mrf.mxu0 }
 0x12d   :  { %v1641_v21 = vpop.f32.mrf.mxu3  ;;  %v1615_v24 = vpop.f32.mrf.mxu1  ;;  %v1628_v25 = vadd.f32 %v1627_v20, %v1614_v22  ;;  %v1602_v26 = vadd.f32 %v1601_v23, %v298_v18 }
 0x12f   :  { %v1642_v28 = vadd.f32 %v1641_v21, %v1628_v25  ;;  %v1616_v29 = vadd.f32 %v1615_v24, %v1602_v26 }
 0x134   :  { %v1629_v27 = vpop.f32.mrf.mxu2 }
 0x135   :  { %v1643_v30 = vpop.f32.mrf.mxu3  ;;  %v1630_v33 = vadd.f32 %v1629_v27, %v1616_v29 }
 0x137   :  { %v1644_v38 = vadd.f32 %v1643_v30, %v1630_v33 }
 0x144   :  { %v1655_v31 = vpop.f32.mrf.mxu0 }
 0x145   :  { %v1656_v39 = vadd.f32 %v1655_v31, %v1642_v28  ;;  %v1669_v32 = vpop.f32.mrf.mxu1 }
 0x147   :  { %v1670_v44 = vadd.f32 %v1669_v32, %v1656_v39 }
 0x14c   :  { %v1683_v34 = vpop.f32.mrf.mxu2  ;;  %v1657_v35 = vpop.f32.mrf.mxu0 }
 0x14d   :  { %v1684_v43 = vadd.f32 %v1683_v34, %v1670_v44  ;;  %v1697_v47 = vpop.f32.mrf.mxu3  ;;  %v1658_v37 = vadd.f32 %v1657_v35, %v1644_v38  ;;  %v1671_v41 = vpop.f32.mrf.mxu1 }
 0x14f   :  { %v1698_v36 = vadd.f32 %v1697_v47, %v1684_v43  ;;  %v1672_v42 = vadd.f32 %v1671_v41, %v1658_v37 }
 0x151   :  { %v1704_v40 = vmax.f32 %v1698_v36, 0.0 }
 0x153   :  { %1710 = vst [vmem:[%s2891_s3 + $0x10] sm:$0xff] %v1704_v40 }
 0x154   :  { %v1685_v45 = vpop.f32.mrf.mxu2 }
 0x155   :  { %v1686_v46 = vadd.f32 %v1685_v45, %v1672_v42  ;;  %v1699_v48 = vpop.f32.mrf.mxu3 }
 0x157   :  { %v1700_v49 = vadd.f32 %v1699_v48, %v1686_v46 }
 0x159   :  { %v1707_v50 = vmax.f32 %v1700_v49, 0.0 }
 0x15b   :  { %1713 = vst [vmem:[%s2891_s3 + $0x28] sm:$0xff] %v1707_v50 }
 0x15c   :  { %1718 = vsyncpa [#allocation3], 1 }

</bundles_post_ra>
